<compile_context>
chip_gen: v5e
topology: v5e:2x2
jax: 0.10.0
libtpu: 0.0.40
codegen_flags: <defaults>
</compile_context>

<pallas_src>
import cmath
import math

import jax
import jax.numpy as jnp
from jax import lax
from jax.experimental import pallas as pl
from jax.experimental.pallas import tpu as pltpu


# ---------------------------------------------------------------------------
# Physical constants (the original `Const` module is not part of the snippet;
# values are fixed deterministically here).
# ---------------------------------------------------------------------------
class Const:
    Lambda0 = 1.55e-6                       # free-space wavelength [m]
    Lambda = Lambda0 / 1.45                 # wavelength in the substrate [m]
    pi = math.pi
    pi_sqrt = math.sqrt(math.pi)
    delta = 1.0e-7
    w0 = 5.0e-7                             # beam waist [m]
    k_RSM = 0.6
    k_GBM = 0.4
    k_sub = 2.0 * math.pi * 1.45 / Lambda0
    F_coupling_coeff = 0.8
    TM02_beta = 2.0 * math.pi * 2.0 / Lambda0
    TM02_eta_decoupling = 0.3
    TM02_phi_decoupling = 0.5


H_NEURON = 3e-6          # h_neuron (module default)
W_NEURON = 9e-7          # w_neuron (unused in forward, kept for parity)

# Complex scalar prefactor folded at trace time:
#   F_coupling_coeff * P_propagation * eta_decoupling * exp(i*phi_decoupling)
_P_PROP = cmath.exp(-1j * Const.TM02_beta * H_NEURON / 2.0)
_C = (Const.F_coupling_coeff * _P_PROP
      * Const.TM02_eta_decoupling * cmath.exp(1j * Const.TM02_phi_decoupling))
C_RE = float(_C.real)
C_IM = float(_C.imag)

# Hoisted scalar constants for the elementwise hot path.
C_RSM = float(Const.k_RSM * math.sqrt(2.0 * Const.w0 / Const.pi_sqrt))
C_WZ = float(Const.Lambda / (Const.pi * Const.w0 * Const.w0))
C_INV_W0SQ = float(1.0 / (Const.w0 * Const.w0))
K_SUB_OVER_2PI = float(Const.k_sub / (2.0 * math.pi))
NEG_TWO_PI = float(-2.0 * math.pi)


# ---------------------------------------------------------------------------
# Parameter / buffer init (reproduces DiffractiveLayer / DiffractiveNetwork)
# ---------------------------------------------------------------------------
def init_diffractive_layer(neuron_number, bound, distance, y):
    start = bound * Const.Lambda0
    end = bound * Const.Lambda0 + distance * neuron_number * Const.Lambda0
    x0 = jnp.linspace(start, end, neuron_number, dtype=jnp.float32)   # parameter
    y0 = jnp.ones_like(x0) * (y * Const.Lambda0)                      # buffer
    return x0, y0


def init_diffractive_network(input_neuron_num, input_distance, input_bound,
                             output_neuron_num, output_distance, output_bound,
                             hidden_layer_num, hidden_neuron_num,
                             hidden_distance, hidden_bound,
                             hidden_layer_distance, output_layer_distance):
    neuron_nums = [input_neuron_num] + list(hidden_neuron_num)
    bounds = [input_bound] + list(hidden_bound)
    distances = [input_distance] + list(hidden_distance)
    y = [0.0]
    for i in range(hidden_layer_num):
        y.append(y[-1] + hidden_layer_distance[i])
    layers = [init_diffractive_layer(neuron_nums[i], bounds[i], distances[i], y[i])
              for i in range(hidden_layer_num + 1)]
    start = output_bound * Const.Lambda0
    end = (output_bound + output_distance * output_neuron_num) * Const.Lambda0
    x_out = jnp.linspace(start, end, output_neuron_num, dtype=jnp.float32)
    y_out = jnp.ones_like(x_out) * ((y[-1] + output_layer_distance) * Const.Lambda0)
    return layers, x_out, y_out


# ---------------------------------------------------------------------------
# Shared in-kernel compute: build the (N, TL) transfer tile and contract with
# the (pre-scaled) stacked waves.  Returns (Re, Im) of shape (B, TL).
# ---------------------------------------------------------------------------
def _field_contract(xc, yc, x0, y0s, w_stacked, b):
    # xc, yc: (1, TL); x0, y0s: (N, 1); w_stacked: (2B, N) (already scaled by C)
    r0 = xc - x0                                           # (N, TL)
    z = jnp.abs(yc - y0s)                                  # (N, TL)
    r0sq = r0 * r0
    rsq = r0sq + z * z
    # Geometry (delta / h_neuron offsets) keeps rsq > 0; no epsilon guard needed.
    inv_r = lax.rsqrt(rsq)                                 # 1/r  (EUP)
    r = rsq * inv_r                                        # r via VPU mul (no extra EUP sqrt)

    # torch: theta = acos(z/r); cos(theta) later  ->  exactly z * (1/r)
    # E_RSM = k_RSM * sqrt(2*w0/(r*sqrt(pi))) * cos(theta)
    e_rsm = C_RSM * jnp.sqrt(inv_r) * (z * inv_r)

    # w0/w = 1/sqrt(1 + (z*Lambda/(pi*w0^2))^2)   (w = beam radius)
    wz = z * C_WZ
    w0_over_w = lax.rsqrt(1.0 + wz * wz)
    # E_GBM = k_GBM * sqrt(w0/w) * exp(-r0^2 / w^2);  1/w^2 = (w0/w)^2 / w0^2
    e_gbm = Const.k_GBM * jnp.sqrt(w0_over_w) * jnp.exp(
        -r0sq * (w0_over_w * w0_over_w) * C_INV_W0SQ)

    amp = e_rsm + e_gbm                                    # (N, TL)

    # Shared explicit range reduction for phase = -k_sub * r:
    #   turns = k_sub*r / (2*pi); frac in [-0.5, 0.5]; theta = -2*pi*frac.
    turns = r * K_SUB_OVER_2PI
    frac = turns - jnp.round(turns)
    theta = frac * NEG_TWO_PI
    u = amp * jnp.cos(theta)                               # Re(amp*exp(-i*k_sub*r))
    v = amp * jnp.sin(theta)                               # Im(amp*exp(-i*k_sub*r))

    # Two MXU pushes, no (N, 2*TL) concat copy.
    # TODO(synk): cast u/v and w_stacked to bf16 (MXU-native) once validated
    # against the 2e-3 per-layer tolerance — kept f32 here for accuracy.
    dn = (((1,), (0,)), ((), ()))
    ru = lax.dot_general(w_stacked, u, dn,
                         preferred_element_type=jnp.float32)    # (2B, TL)
    rv = lax.dot_general(w_stacked, v, dn,
                         preferred_element_type=jnp.float32)    # (2B, TL)
    p = ru[:b] - rv[b:]      # Re((C*waves) @ T^T)
    q = rv[:b] + ru[b:]      # Im((C*waves) @ T^T)
    return p, q


# ---------------------------------------------------------------------------
# Pallas kernels
# ---------------------------------------------------------------------------
def _diffractive_kernel(xc_ref, yc_ref, x0_ref, y0s_ref, w_ref, ore_ref, oim_ref):
    p, q = _field_contract(xc_ref[...], yc_ref[...], x0_ref[...], y0s_ref[...],
                           w_ref[...], ore_ref.shape[0])
    ore_ref[...] = p
    oim_ref[...] = q


def _diffractive_softmax_kernel(xc_ref, yc_ref, x0_ref, y0s_ref, w_ref,
                                o_ref, im_sc):
    # Final layer: writes Re into the resident (B, L) output, Im into VMEM
    # scratch; last grid step applies |.| + softmax in place (fused epilogue).
    i = pl.program_id(0)
    tl = xc_ref.shape[1]
    p, q = _field_contract(xc_ref[...], yc_ref[...], x0_ref[...], y0s_ref[...],
                           w_ref[...], o_ref.shape[0])
    start = pl.multiple_of(i * tl, tl)
    o_ref[:, pl.ds(start, tl)] = p
    im_sc[:, pl.ds(start, tl)] = q

    @pl.when(i == pl.num_programs(0) - 1)
    def _():
        re = o_ref[...]
        im = im_sc[...]
        mag = jnp.sqrt(re * re + im * im)
        m = jnp.max(mag, axis=-1, keepdims=True)
        e = jnp.exp(mag - m)
        s = jnp.sum(e, axis=-1, keepdims=True)
        o_ref[...] = e * pl.reciprocal(s, approx=True)


# ---------------------------------------------------------------------------
# Generation-aware VMEM budget and tile choice.
# ---------------------------------------------------------------------------
def _vmem_limit_bytes():
    try:
        cap = int(pltpu.get_tpu_info().vmem_capacity_bytes)
    except Exception:
        cap = 64 * 1024 * 1024
    if cap >= 100 * 1024 * 1024:       # v5e / v6e: 128 MiB physical VMEM
        return 64 * 1024 * 1024
    return 32 * 1024 * 1024            # v7x: 64 MiB physical VMEM


def _choose_tile(L, N, vmem_limit):
    """Largest lane-aligned destination tile that (a) fits the per-step live
    set in the VMEM budget and (b) gives >=2 grid steps when L allows it
    (so both TensorCores get work on v7x)."""
    if L % 128 != 0:
        return L
    budget = vmem_limit // 2           # headroom for double-buffered IO/outputs
    fitting = []
    for tl in (1024, 512, 256, 128):
        if L % tl != 0:
            continue
        # ~12 live (N, tl) f32 temps incl. the two MXU operands u, v.
        if 12 * N * tl * 4 <= budget:
            fitting.append(tl)
    if not fitting:
        return 128
    for tl in fitting:                 # descending: biggest tile with >=2 steps
        if L // tl >= 2:
            return tl
    return fitting[0]


# ---------------------------------------------------------------------------
# One DiffractiveLayer forward.  If fuse_softmax, the |.|+softmax tail of
# DiffractiveNetwork.forward is fused into the same pallas_call.
# ---------------------------------------------------------------------------
def diffractive_layer_forward(waves_re, waves_im, x_cords, y_cords, x0, y0,
                              *, fuse_softmax=False):
    B, N = waves_re.shape
    L = int(x_cords.size)
    vmem_limit = _vmem_limit_bytes()
    tl = _choose_tile(L, N, vmem_limit)

    xc = x_cords.reshape(1, L).astype(jnp.float32)
    yc = y_cords.reshape(1, L).astype(jnp.float32)
    x0c = x0.reshape(N, 1).astype(jnp.float32)
    # Hoist the constant shift out of the kernel (same evaluation order as the
    # torch code, which also computes (y0 - h_neuron - delta) first).
    y0s = (y0.reshape(N, 1) - H_NEURON - Const.delta).astype(jnp.float32)

    # Fold the complex prefactor C into the tiny (2B, N) waves operand so the
    # in-kernel post-matmul recombination is just p = rr - ii, q = ri + ir.
    wre = C_RE * waves_re - C_IM * waves_im
    wim = C_RE * waves_im + C_IM * waves_re
    w_stacked = jnp.concatenate([wre, wim], axis=0).astype(jnp.float32)

    in_specs = [
        pl.BlockSpec((1, tl), lambda i: (0, i)),      # x_cords tile (lanes)
        pl.BlockSpec((1, tl), lambda i: (0, i)),      # y_cords tile (lanes)
        pl.BlockSpec((N, 1), lambda i: (0, 0)),       # x0 (resident)
        pl.BlockSpec((N, 1), lambda i: (0, 0)),       # y0 shifted (resident)
        pl.BlockSpec((2 * B, N), lambda i: (0, 0)),   # stacked C*waves (resident)
    ]
    grid = (L // tl,)

    if fuse_softmax:
        return pl.pallas_call(
            _diffractive_softmax_kernel,
            out_shape=jax.ShapeDtypeStruct((B, L), jnp.float32),
            grid_spec=pltpu.PrefetchScalarGridSpec(
                num_scalar_prefetch=0,
                grid=grid,
                in_specs=in_specs,
                out_specs=pl.BlockSpec((B, L), lambda i: (0, 0)),
                scratch_shapes=[pltpu.VMEM((B, L), jnp.float32)]),
            compiler_params=pltpu.CompilerParams(
                dimension_semantics=("arbitrary",),
                vmem_limit_bytes=vmem_limit),
        )(xc, yc, x0c, y0s, w_stacked)

    out_shape = (jax.ShapeDtypeStruct((B, L), jnp.float32),
                 jax.ShapeDtypeStruct((B, L), jnp.float32))
    ex_re, ex_im = pl.pallas_call(
        _diffractive_kernel,
        out_shape=out_shape,
        grid_spec=pltpu.PrefetchScalarGridSpec(
            num_scalar_prefetch=0,
            grid=grid,
            in_specs=in_specs,
            out_specs=[pl.BlockSpec((B, tl), lambda i: (0, i)),
                       pl.BlockSpec((B, tl), lambda i: (0, i))],
        ),
        compiler_params=pltpu.CompilerParams(
            dimension_semantics=("parallel",),
            vmem_limit_bytes=vmem_limit),
    )(xc, yc, x0c, y0s, w_stacked)
    return ex_re, ex_im


def diffractive_network_forward(waves_re, waves_im, layers, x_out, y_out):
    # TODO(synk): for inference with frozen x0/y0, precompute each layer's
    # (N, 2L) transfer matrix once (bf16) and reduce each layer to a single
    # streaming matmul kernel (shifts the work from EUP-bound to HBM-bound).
    for i in range(len(layers) - 1):
        x0, y0 = layers[i]
        xc, yc = layers[i + 1]
        waves_re, waves_im = diffractive_layer_forward(
            waves_re, waves_im, xc, yc, x0, y0)
    x0, y0 = layers[-1]
    # Final layer with the |.| + softmax tail fused into the same kernel.
    return diffractive_layer_forward(
        waves_re, waves_im, x_out, y_out, x0, y0, fuse_softmax=True)


# ---------------------------------------------------------------------------
# Pure-JAX complex64 reference (literal transcription of the torch forward).
# ---------------------------------------------------------------------------
def _reference_layer(waves_c, x_cords, y_cords, x0, y0):
    xc = x_cords.reshape(-1, 1).astype(jnp.float32)
    yc = y_cords.reshape(-1, 1).astype(jnp.float32)
    r0 = xc - x0[None, :]
    z = jnp.abs(yc - (y0[None, :] - H_NEURON - Const.delta))
    r = jnp.sqrt(r0 ** 2 + z ** 2)
    # clip only guards the degenerate r0 == 0 rounding case (z/r = 1 + eps);
    # mathematically identical to the torch code otherwise.
    theta = jnp.arccos(jnp.clip(z / r, -1.0, 1.0))
    w = Const.w0 * jnp.sqrt(
        1.0 + (z * Const.Lambda / Const.pi / Const.w0 ** 2) ** 2)
    e_rsm_coeff = jnp.sqrt(2.0 * Const.w0 / r / Const.pi_sqrt)
    e_gbm_coeff = jnp.exp(-r0 ** 2 / w ** 2)
    e_rsm = Const.k_RSM * e_rsm_coeff * jnp.cos(theta)
    e_gbm = Const.k_GBM * jnp.sqrt(Const.w0 / w) * e_gbm_coeff
    p_prop = cmath.exp(-1j * Const.TM02_beta * H_NEURON / 2.0)
    g = (Const.TM02_eta_decoupling * jnp.exp(1j * Const.TM02_phi_decoupling)
         * (e_rsm + e_gbm) * jnp.exp(-1j * (Const.k_sub * r)))
    ex_tem02 = Const.F_coupling_coeff * p_prop * g
    return waves_c @ ex_tem02.T


def _reference_network(waves_c, layers, x_out, y_out):
    for i in range(len(layers) - 1):
        x0, y0 = layers[i]
        waves_c = _reference_layer(waves_c, layers[i + 1][0], layers[i + 1][1],
                                   x0, y0)
    x0, y0 = layers[-1]
    waves_c = _reference_layer(waves_c, x_out, y_out, x0, y0)
    return jax.nn.softmax(jnp.abs(waves_c), axis=-1)


if __name__ == "__main__":
    # Small, deterministic DiffractiveNetwork configuration.
    B = 2
    input_neuron_num, input_distance, input_bound = 32, 1.0, 2.0
    hidden_layer_num = 2
    hidden_neuron_num = [64, 256]
    hidden_distance = [1.0, 0.5]
    hidden_bound = [2.5, 3.0]
    hidden_layer_distance = [5.0, 5.0]
    output_neuron_num, output_distance, output_bound = 128, 0.5, 3.5
    output_layer_distance = 5.0

    layers, x_out, y_out = init_diffractive_network(
        input_neuron_num, input_distance, input_bound,
        output_neuron_num, output_distance, output_bound,
        hidden_layer_num, hidden_neuron_num, hidden_distance, hidden_bound,
        hidden_layer_distance, output_layer_distance)

    key = jax.random.PRNGKey(0)
    k1, k2 = jax.random.split(key)
    waves_re = jax.random.normal(k1, (B, input_neuron_num), dtype=jnp.float32)
    waves_im = jax.random.normal(k2, (B, input_neuron_num), dtype=jnp.float32)

    # Full-network forward through the Pallas kernels.
    probs = diffractive_network_forward(waves_re, waves_im, layers, x_out, y_out)
    probs = jax.block_until_ready(probs)

    # Strong per-element check on the first layer's complex field.
    l0_re, l0_im = diffractive_layer_forward(
        waves_re, waves_im, layers[1][0], layers[1][1],
        layers[0][0], layers[0][1])
    jax.block_until_ready((l0_re, l0_im))
    ref_l0 = _reference_layer(waves_re + 1j * waves_im,
                              layers[1][0], layers[1][1],
                              layers[0][0], layers[0][1])
    err_layer = max(float(jnp.max(jnp.abs(l0_re - ref_l0.real))),
                    float(jnp.max(jnp.abs(l0_im - ref_l0.imag))))
    assert err_layer < 2e-3, f"layer-0 max abs error vs reference: {err_layer}"

    # End-to-end check on the softmax output.
    ref_probs = _reference_network(waves_re + 1j * waves_im, layers, x_out, y_out)
    err_net = float(jnp.max(jnp.abs(probs - ref_probs)))
    assert err_net < 5e-3, f"network max abs error vs reference: {err_net}"

    print("KERNEL_OK")
</pallas_src>

<mosaic_0001>
module attributes {stable_mosaic.version = 11 : i64} {
  func.func @_diffractive_kernel(%arg0: i32, %arg1: memref<1x64xf32, #tpu.memory_space<vmem>>, %arg2: memref<1x64xf32, #tpu.memory_space<vmem>>, %arg3: memref<32x1xf32, #tpu.memory_space<vmem>>, %arg4: memref<32x1xf32, #tpu.memory_space<vmem>>, %arg5: memref<4x32xf32, #tpu.memory_space<vmem>>, %arg6: memref<2x64xf32, #tpu.memory_space<vmem>>, %arg7: memref<2x64xf32, #tpu.memory_space<vmem>>) attributes {dimension_semantics = [#tpu.dimension_semantics<parallel>], iteration_bounds = array<i64: 1>, scalar_prefetch = 0 : i64, scratch_operands = 0 : i64, tpu.core_type = #tpu.core_type<tc>, window_params = [{transform_indices = @transform_0, window_bounds = array<i64: 1, 64>}, {transform_indices = @transform_1, window_bounds = array<i64: 1, 64>}, {pipeline_mode = #tpu.pipeline_mode<synchronous>, transform_indices = @transform_2, window_bounds = array<i64: 32, 1>}, {pipeline_mode = #tpu.pipeline_mode<synchronous>, transform_indices = @transform_3, window_bounds = array<i64: 32, 1>}, {pipeline_mode = #tpu.pipeline_mode<synchronous>, transform_indices = @transform_4, window_bounds = array<i64: 4, 32>}, {transform_indices = @transform_5, window_bounds = array<i64: 2, 64>}, {transform_indices = @transform_6, window_bounds = array<i64: 2, 64>}]} {
    %c0 = arith.constant 0 : index
    %c0_0 = arith.constant 0 : index
    %0 = vector.load %arg1[%c0, %c0_0] : memref<1x64xf32, #tpu.memory_space<vmem>>, vector<1x64xf32>
    %c0_1 = arith.constant 0 : index
    %c0_2 = arith.constant 0 : index
    %1 = vector.load %arg2[%c0_1, %c0_2] : memref<1x64xf32, #tpu.memory_space<vmem>>, vector<1x64xf32>
    %c0_3 = arith.constant 0 : index
    %c0_4 = arith.constant 0 : index
    %2 = vector.load %arg3[%c0_3, %c0_4] : memref<32x1xf32, #tpu.memory_space<vmem>>, vector<32x1xf32>
    %c0_5 = arith.constant 0 : index
    %c0_6 = arith.constant 0 : index
    %3 = vector.load %arg4[%c0_5, %c0_6] : memref<32x1xf32, #tpu.memory_space<vmem>>, vector<32x1xf32>
    %c0_7 = arith.constant 0 : index
    %c0_8 = arith.constant 0 : index
    %4 = vector.load %arg5[%c0_7, %c0_8] : memref<4x32xf32, #tpu.memory_space<vmem>>, vector<4x32xf32>
    %5 = vector.broadcast %0 : vector<1x64xf32> to vector<32x64xf32>
    %6 = vector.broadcast %2 : vector<32x1xf32> to vector<32x64xf32>
    %7 = arith.subf %5, %6 : vector<32x64xf32>
    %8 = vector.broadcast %1 : vector<1x64xf32> to vector<32x64xf32>
    %9 = vector.broadcast %3 : vector<32x1xf32> to vector<32x64xf32>
    %10 = arith.subf %8, %9 : vector<32x64xf32>
    %11 = math.absf %10 : vector<32x64xf32>
    %12 = arith.mulf %7, %7 : vector<32x64xf32>
    %13 = arith.mulf %11, %11 : vector<32x64xf32>
    %14 = arith.addf %12, %13 : vector<32x64xf32>
    %15 = math.rsqrt %14 : vector<32x64xf32>
    %16 = arith.mulf %14, %15 : vector<32x64xf32>
    %17 = math.sqrt %15 : vector<32x64xf32>
    %cst = arith.constant 4.50675318E-4 : f32
    %18 = vector.broadcast %cst : f32 to vector<32x64xf32>
    %19 = arith.mulf %18, %17 : vector<32x64xf32>
    %20 = arith.mulf %11, %15 : vector<32x64xf32>
    %21 = arith.mulf %19, %20 : vector<32x64xf32>
    %cst_9 = arith.constant 1361049.13 : f32
    %22 = vector.broadcast %cst_9 : f32 to vector<32x64xf32>
    %23 = arith.mulf %11, %22 : vector<32x64xf32>
    %24 = arith.mulf %23, %23 : vector<32x64xf32>
    %cst_10 = arith.constant 1.000000e+00 : f32
    %25 = vector.broadcast %cst_10 : f32 to vector<32x64xf32>
    %26 = arith.addf %25, %24 : vector<32x64xf32>
    %27 = math.rsqrt %26 : vector<32x64xf32>
    %28 = math.sqrt %27 : vector<32x64xf32>
    %cst_11 = arith.constant 4.000000e-01 : f32
    %29 = vector.broadcast %cst_11 : f32 to vector<32x64xf32>
    %30 = arith.mulf %29, %28 : vector<32x64xf32>
    %cst_12 = arith.constant 0.000000e+00 : f32
    %31 = vector.broadcast %cst_12 : f32 to vector<32x64xf32>
    %32 = arith.subf %31, %12 : vector<32x64xf32>
    %33 = arith.mulf %27, %27 : vector<32x64xf32>
    %34 = arith.mulf %32, %33 : vector<32x64xf32>
    %cst_13 = arith.constant 4.000000e+12 : f32
    %35 = vector.broadcast %cst_13 : f32 to vector<32x64xf32>
    %36 = arith.mulf %34, %35 : vector<32x64xf32>
    %37 = math.exp %36 : vector<32x64xf32>
    %38 = arith.mulf %30, %37 : vector<32x64xf32>
    %39 = arith.addf %21, %38 : vector<32x64xf32>
    %cst_14 = arith.constant 935483.875 : f32
    %40 = vector.broadcast %cst_14 : f32 to vector<32x64xf32>
    %41 = arith.mulf %16, %40 : vector<32x64xf32>
    %42 = math.roundeven %41 : vector<32x64xf32>
    %43 = arith.subf %41, %42 : vector<32x64xf32>
    %cst_15 = arith.constant -6.28318548 : f32
    %44 = vector.broadcast %cst_15 : f32 to vector<32x64xf32>
    %45 = arith.mulf %43, %44 : vector<32x64xf32>
    %46 = math.cos %45 : vector<32x64xf32>
    %47 = arith.mulf %39, %46 : vector<32x64xf32>
    %48 = math.sin %45 : vector<32x64xf32>
    %49 = arith.mulf %39, %48 : vector<32x64xf32>
    %cst_16 = arith.constant dense<0.000000e+00> : vector<4x64xf32>
    %50 = tpu.matmul %4, %47, %cst_16 {dimension_numbers = #tpu.dot_dimension_numbers<[1], [0], [0], [1], [0, 0, 1, 1], [], []>} : vector<4x32xf32>, vector<32x64xf32>, vector<4x64xf32> -> vector<4x64xf32>
    %cst_17 = arith.constant dense<0.000000e+00> : vector<4x64xf32>
    %51 = tpu.matmul %4, %49, %cst_17 {dimension_numbers = #tpu.dot_dimension_numbers<[1], [0], [0], [1], [0, 0, 1, 1], [], []>} : vector<4x32xf32>, vector<32x64xf32>, vector<4x64xf32> -> vector<4x64xf32>
    %52 = vector.extract_strided_slice %50 {offsets = [0, 0], sizes = [2, 64], strides = [1, 1]} : vector<4x64xf32> to vector<2x64xf32>
    %53 = vector.extract_strided_slice %51 {offsets = [2, 0], sizes = [2, 64], strides = [1, 1]} : vector<4x64xf32> to vector<2x64xf32>
    %54 = arith.subf %52, %53 : vector<2x64xf32>
    %55 = vector.extract_strided_slice %51 {offsets = [0, 0], sizes = [2, 64], strides = [1, 1]} : vector<4x64xf32> to vector<2x64xf32>
    %56 = vector.extract_strided_slice %50 {offsets = [2, 0], sizes = [2, 64], strides = [1, 1]} : vector<4x64xf32> to vector<2x64xf32>
    %57 = arith.addf %55, %56 : vector<2x64xf32>
    %c0_18 = arith.constant 0 : index
    %c0_19 = arith.constant 0 : index
    %58 = vector.load %arg6[%c0_18, %c0_19] : memref<2x64xf32, #tpu.memory_space<vmem>>, vector<2x64xf32>
    tpu.vector_store %arg6[%c0_18, %c0_19], %54 {strides = array<i32>} : memref<2x64xf32, #tpu.memory_space<vmem>>, vector<2x64xf32>,
    %c0_20 = arith.constant 0 : index
    %c0_21 = arith.constant 0 : index
    %59 = vector.load %arg7[%c0_20, %c0_21] : memref<2x64xf32, #tpu.memory_space<vmem>>, vector<2x64xf32>
    tpu.vector_store %arg7[%c0_20, %c0_21], %57 {strides = array<i32>} : memref<2x64xf32, #tpu.memory_space<vmem>>, vector<2x64xf32>,
    return
  }
  func.func @transform_0(%arg0: i32) -> (i32, i32) {
    %c0_i32 = arith.constant 0 : i32
    %c0_i32_0 = arith.constant 0 : i32
    return %c0_i32, %arg0 : i32, i32
  }
  func.func @transform_1(%arg0: i32) -> (i32, i32) {
    %c0_i32 = arith.constant 0 : i32
    %c0_i32_0 = arith.constant 0 : i32
    return %c0_i32, %arg0 : i32, i32
  }
  func.func @transform_2(%arg0: i32) -> (i32, i32) {
    %c0_i32 = arith.constant 0 : i32
    %c0_i32_0 = arith.constant 0 : i32
    %c0_i32_1 = arith.constant 0 : i32
    return %c0_i32, %c0_i32_0 : i32, i32
  }
  func.func @transform_3(%arg0: i32) -> (i32, i32) {
    %c0_i32 = arith.constant 0 : i32
    %c0_i32_0 = arith.constant 0 : i32
    %c0_i32_1 = arith.constant 0 : i32
    return %c0_i32, %c0_i32_0 : i32, i32
  }
  func.func @transform_4(%arg0: i32) -> (i32, i32) {
    %c0_i32 = arith.constant 0 : i32
    %c0_i32_0 = arith.constant 0 : i32
    %c0_i32_1 = arith.constant 0 : i32
    return %c0_i32, %c0_i32_0 : i32, i32
  }
  func.func @transform_5(%arg0: i32) -> (i32, i32) {
    %c0_i32 = arith.constant 0 : i32
    %c0_i32_0 = arith.constant 0 : i32
    return %c0_i32, %arg0 : i32, i32
  }
  func.func @transform_6(%arg0: i32) -> (i32, i32) {
    %c0_i32 = arith.constant 0 : i32
    %c0_i32_0 = arith.constant 0 : i32
    return %c0_i32, %arg0 : i32, i32
  }
}

</mosaic_0001>

<bundles_post_ra>
// kernel: tpu_custom_call.1
= control target key start
LH: loop header
LB: loop body
LE: loop exit
PB: predicated region body
PF: predicated region fallthrough
CT: control target
= control target key end

     0   :  { %12 = vsyncpa [#allocation3], 0  ;;  %v1856_v3 = vmov 0   ;;  %s2654_s0 = inlined_call_operand.vmem [shape: f32[1,64], index: 0, kind: input, shape index: {}]   ;;  %s2655_s1 = inlined_call_operand.vmem [shape: f32[1,64], index: 1, kind: input, shape index: {}]   ;;  %s2656_s2 = inlined_call_operand.vmem [shape: f32[32,1], index: 2, kind: input, shape index: {}]   ;;  %s2657_s3 = inlined_call_operand.vmem [shape: f32[32,1], index: 3, kind: input, shape index: {}]   ;;  %s2658_s4 = inlined_call_operand.vmem [shape: f32[4,32], index: 4, kind: input, shape index: {}]   ;;  %s2659_s5 = inlined_call_operand.hbm [shape: f32[2,64], index: 5, kind: output, shape index: {0}]   ;;  %s2660_s6 = inlined_call_operand.hbm [shape: f32[2,64], index: 6, kind: output, shape index: {1}]  }
   0x1   :  { %v33_v0 = vld [vmem:[%s2657_s3 + $0x18] sm:$0xff]  ;;  %v32_v1 = vld [vmem:[%s2657_s3 + $0x10] sm:$0xff]  ;;  %v31_v2 = vld [vmem:[%s2657_s3 + $0x8] sm:$0xff]  ;;  %1761 = vset.pattern.permute.xlu2 %v1856_v3  ;;  %1760 = vset.pattern.permute.xlu1 %v1856_v3 }
   0x2   :  { %1759 = vset.pattern.permute.xlu0 %v1856_v3  ;;  %77 = vperm.xlu1 %1760, %v32_v1  }
   0x3   :  { %82 = vperm.xlu0 %1759, %v33_v0   ;;  %72 = vperm.xlu2 %1761, %v31_v2  }
   0x4   :  { %13 = vsyncpa [#allocation5], 0  ;;  %v28_v4 = vld [vmem:[%s2656_s2 + $0x10] sm:$0xff]  ;;  %v29_v5 = vld [vmem:[%s2656_s2 + $0x18] sm:$0xff]  ;;  %s1863_s15 = smov [#allocation4]   ;;  %s1678_s19 = sshll.u32 %s2660_s6, 4  ;;  %s1679_s19 = int_to_ptr.hbm [resolvable:$true] %s1678_s19 }
   0x5   :  { %v27_v6 = vld [vmem:[%s2656_s2 + $0x8] sm:$0xff]  ;;  %v26_v7 = vld [vmem:[%s2656_s2] sm:$0xff]  ;;  %s1676_s16 = sshll.u32 %s1863_s15, 4  ;;  %s1864_s20 = smov [#allocation2]   ;;  %s1677_s16 = int_to_ptr.vmem [resolvable:$true] %s1676_s16 }
   0x6   :  { %v30_v8 = vld [vmem:[%s2657_s3] sm:$0xff]  ;;  %s1665_s21 = sshll.u32 %s1864_s20, 4  ;;  %s1666_s21 = int_to_ptr.vmem [resolvable:$true] %s1665_s21 }
   0x7   :  { %v1930_v9 = vld [vmem:[%s2655_s1] ss:$0 sm:$0xff] }
   0x8   :  { %v1943_v19 = vld [vmem:[%s2654_s0] ss:$0 sm:$0xff] }
   0xa   :  { %50 = vperm.xlu1 %1760, %v28_v4  }
   0xb   :  { %55 = vperm.xlu0 %1759, %v29_v5   ;;  %45 = vperm.xlu2 %1761, %v27_v6  }
  0x12   :  { %40 = vperm.xlu1 %1760, %v26_v7  }
  0x13   :  { %67 = vperm.xlu0 %1759, %v30_v8  }
  0x5d   :  { %v73_v10 = vpop.permute.xlu2 %72 }
  0x5e   :  { %v86_v29 = vsub.f32 %v1930_v9, %v73_v10 }
  0x60   :  { %v1955_v36 = vand.u32 2147483647, %v86_v29 }
  0x62   :  { %v98_v40 = vmul.f32 %v1955_v36, %v1955_v36 }
  0x65   :  { %v46_v26 = vpop.permute.xlu2 %45 }
  0x66   :  { %v59_v32 = vsub.f32 %v1943_v19, %v46_v26 }
  0x68   :  { %v1958_v39 = vmul.f32 %v59_v32, %v59_v32 }
  0x6a   :  { %v1963_v46 = vadd.f32 %v98_v40, %v1958_v39 }
  0x74   :  { %v78_v11 = vpop.permute.xlu1 %77 }
  0x75   :  { %v83_v12 = vpop.permute.xlu0 %82  ;;  %v87_v13 = vsub.f32 %v1930_v9, %v78_v11 }
  0x76   :  { %v88_v14 = vsub.f32 %v1930_v9, %v83_v12 }
  0x77   :  { %v1934_v15 = vand.u32 2147483647, %v87_v13 }
  0x78   :  { %v1936_v16 = vand.u32 2147483647, %v88_v14 }
  0x79   :  { %v211_v17 = vmul.f32 1361049.1, %v1934_v15  ;;  %v99_v31 = vmul.f32 %v1934_v15, %v1934_v15 }
  0x7a   :  { %v212_v18 = vmul.f32 1361049.1, %v1936_v16  ;;  %v100_v34 = vmul.f32 %v1936_v16, %v1936_v16 }
  0x7b   :  { %v215_v20 = vmul.f32 %v211_v17, %v211_v17 }
  0x7c   :  { %v216_v21 = vmul.f32 %v212_v18, %v212_v18  ;;  %v51_v22 = vpop.permute.xlu1 %50  ;;  %v210_v18 = vmul.f32 1361049.1, %v1955_v36 }
  0x7d   :  { %v219_v23 = vadd.f32 1.0, %v215_v20  ;;  %v56_v24 = vpop.permute.xlu0 %55  ;;  %v60_v25 = vsub.f32 %v1943_v19, %v51_v22 }
  0x7e   :  { %v220_v27 = vadd.f32 1.0, %v216_v21  ;;  %v61_v28 = vsub.f32 %v1943_v19, %v56_v24 }
  0x7f   :  { %1764 = vrsqrt.f32 %v219_v23  ;;  %v95_v30 = vmul.f32 %v60_v25, %v60_v25  ;;  %vm247_vm2 = vweird.f32 %v219_v23 }
  0x80   :  { %1766 = vrsqrt.f32 %v220_v27  ;;  %v96_v33 = vmul.f32 %v61_v28, %v61_v28  ;;  %vm257_vm3 = vweird.f32 %v220_v27  ;;  %v214_v28 = vmul.f32 %v210_v18, %v210_v18 }
  0x81   :  { %v1953_v35 = vadd.f32 %v99_v31, %v95_v30  ;;  %v315_v61 = vsub.f32 0.0, %v95_v30 }
  0x82   :  { %v104_v37 = vadd.f32 %v100_v34, %v96_v33  ;;  %v316_v60 = vsub.f32 0.0, %v96_v33 }
  0x83   :  { %1768 = vrsqrt.f32 %v1953_v35  ;;  %vm131_vm8 = vweird.f32 %v1953_v35 }
  0x84   :  { %1770 = vrsqrt.f32 %v104_v37  ;;  %vm141_vm10 = vweird.f32 %v104_v37  ;;  %v41_v40 = vpop.permute.xlu1 %40 }
  0x85   :  { %v1765_v38 = vpop.eup %1764  ;;  %1772 = vrsqrt.f32 %v1963_v46 }
  0x86   :  { %v1767_v41 = vpop.eup %1766  ;;  %v242_v42 = vmul.f32 %v1765_v38, %v219_v23  ;;  %vm248_vm0 = vweird.f32 %v1765_v38  ;;  %v68_v23 = vpop.permute.xlu0 %67 }
  0x87   :  { %v252_v43 = vmul.f32 %v1767_v41, %v220_v27  ;;  %vm258_vm1 = vweird.f32 %v1767_v41  ;;  %vm249_vm4 = vmor %vm247_vm2, %vm248_vm0  ;;  %v85_v32 = vsub.f32 %v1930_v9, %v68_v23 }
  0x88   :  { %v243_v44 = vmul.f32 %v1765_v38, %v242_v42  ;;  %vm259_vm5 = vmor %vm257_vm3, %vm258_vm1 }
  0x89   :  { %v1769_v45 = vpop.eup %1768  ;;  %v253_v47 = vmul.f32 %v1767_v41, %v252_v43 }
  0x8a   :  { %v244_v48 = vmul.f32 0.5, %v243_v44  ;;  %v126_v49 = vmul.f32 %v1769_v45, %v1953_v35  ;;  %v1771_v50 = vpop.eup %1770  ;;  %vm132_vm6 = vweird.f32 %v1769_v45 }
  0x8b   :  { %v254_v51 = vmul.f32 0.5, %v253_v47  ;;  %v136_v53 = vmul.f32 %v1771_v50, %v104_v37  ;;  %vm142_vm7 = vweird.f32 %v1771_v50  ;;  %v1977_v7 = vpop.eup %1772  ;;  %vm133_vm9 = vmor %vm131_vm8, %vm132_vm6 }
  0x8c   :  { %v245_v52 = vsub.f32 1.5, %v244_v48  ;;  %v127_v54 = vmul.f32 %v1769_v45, %v126_v49  ;;  %vm143_vm11 = vmor %vm141_vm10, %vm142_vm7  ;;  %v116_v20 = vmul.f32 %v1977_v7, %v1963_v46  ;;  %v2007_v48 = vadd.f32 1.0, %v214_v28 }
  0x8d   :  { %v255_v55 = vsub.f32 1.5, %v254_v51  ;;  %v137_v57 = vmul.f32 %v1771_v50, %v136_v53  ;;  %v58_v51 = vsub.f32 %v1943_v19, %v41_v40 }
  0x8e   :  { %v246_v56 = vmul.f32 %v1765_v38, %v245_v52  ;;  %v128_v58 = vmul.f32 0.5, %v127_v54  ;;  %v117_v29 = vmul.f32 %v1977_v7, %v116_v20 }
  0x8f   :  { %v256_v59 = vmul.f32 %v1767_v41, %v255_v55  ;;  %v138_v63 = vmul.f32 0.5, %v137_v57  ;;  %v2016_v57 = vand.u32 2147483647, %v85_v32 }
  0x90   :  { %v1967_v62 = vsel %vm249_vm4, %v1765_v38, %v246_v56  ;;  %v129_v0 = vsub.f32 1.5, %v128_v58  ;;  %v2009_v9 = vmul.f32 0.5, %v117_v29 }
  0x91   :  { %v1969_v1 = vsel %vm259_vm5, %v1767_v41, %v256_v59  ;;  %v319_v2 = vmul.f32 %v1967_v62, %v1967_v62  ;;  %v139_v4 = vsub.f32 1.5, %v138_v63  ;;  %vm292_vm4 = vcmp.eq.f32.partialorder %v1967_v62, inf }
  0x92   :  { %1774 = vrsqrt.f32 %v1969_v1  ;;  %v320_v5 = vmul.f32 %v1969_v1, %v1969_v1  ;;  %v130_v6 = vmul.f32 %v1769_v45, %v129_v0  ;;  %vm304_vm13 = vcmp.eq.f32.partialorder %v1969_v1, inf }
  0x93   :  { %v1979_v8 = vmul.f32 %v319_v2, %v315_v61  ;;  %v140_v10 = vmul.f32 %v1771_v50, %v139_v4  ;;  %vm306_vm14 = vcmp.eq.f32.partialorder %v1969_v1, 0.0  ;;  %vm294_vm5 = vcmp.eq.f32.partialorder %v1967_v62, 0.0 }
  0x94   :  { %v324_v11 = vmul.f32 %v320_v5, %v316_v60  ;;  %v1981_v12 = vsel %vm133_vm9, %v1769_v45, %v130_v6 }
  0x95   :  { %1776 = vrsqrt.f32 %v1981_v12  ;;  %v1984_v13 = vsel %vm143_vm11, %v1771_v50, %v140_v10  ;;  %v2005_v47 = vmul.f32 %v1981_v12, %v1934_v15  ;;  %v147_v55 = vmul.f32 %v1981_v12, %v1953_v35 }
  0x96   :  { %v148_v14 = vmul.f32 %v1984_v13, %v104_v37  ;;  %1778 = vrsqrt.f32 %v1984_v13  ;;  %v328_v22 = vmul.f32 4e+12, %v324_v11  ;;  %v1994_v25 = vmul.f32 %v1984_v13, %v1936_v16 }
  0x97   :  { %1780 = vrsqrt.f32 %v1967_v62  ;;  %v307_v35 = vand.u32 2147483648, %v1969_v1  ;;  %v2023_v2 = vmul.f32 935483.9, %v147_v55  ;;  %v327_v10 = vmul.f32 4e+12, %v1979_v8 }
  0x98   :  { %v1775_v17 = vpop.eup %1774  ;;  %v348_v21 = vmul.f32 935483.9, %v148_v14  ;;  %v335_v38 = vmul.f32 1.442695, %v328_v22  ;;  %vm192_vm15 = vcmp.eq.f32.partialorder %v1984_v13, inf  ;;  %vm180_vm0 = vcmp.eq.f32.partialorder %v1981_v12, inf }
  0x99   :  { %v298_v26 = vmul.f32 %v1775_v17, %v1969_v1  ;;  %vm194_vm1 = vcmp.eq.f32.partialorder %v1984_v13, 0.0  ;;  %vm182_vm2 = vcmp.eq.f32.partialorder %v1981_v12, 0.0  ;;  %vm121_vm11 = vweird.f32 %v1963_v46 }
  0x9a   :  { %v1744_v27 = vcvt.f32.s32 %v348_v21  ;;  %v1742_v41 = vand.u32 2147483647, %v348_v21  ;;  %v1747_v45 = vand.u32 2147483648, %v348_v21  ;;  %1782 = vpow2.f32 %v335_v38 }
  0x9b   :  { %v1777_v24 = vpop.eup %1776  ;;  %v299_v33 = vmul.f32 %v1775_v17, %v298_v26  ;;  %v119_v38 = vsub.f32 1.5, %v2009_v9 }
  0x9c   :  { %v174_v30 = vmul.f32 %v1777_v24, %v1981_v12  ;;  %v1779_v31 = vpop.eup %1778  ;;  %v1745_v34 = vcvt.s32.f32 %v1744_v27  ;;  %vm1743_vm12 = vcmp.lt.f32.partialorder %v1742_v41, 8388608.0  ;;  %v183_v27 = vand.u32 2147483648, %v1981_v12 }
  0x9d   :  { %v2000_v37 = vpop.eup %1780  ;;  %v186_v16 = vmul.f32 %v1779_v31, %v1984_v13  ;;  %v300_v43 = vmul.f32 0.5, %v299_v33 }
  0x9e   :  { %v175_v42 = vmul.f32 %v1777_v24, %v174_v30  ;;  %v1746_v44 = vand.u32 2147483647, %v1745_v34  ;;  %v286_v54 = vmul.f32 %v2000_v37, %v1967_v62 }
  0x9f   :  { %v187_v49 = vmul.f32 %v1779_v31, %v186_v16  ;;  %v301_v52 = vsub.f32 1.5, %v300_v43 }
  0xa0   :  { %v176_v50 = vmul.f32 0.5, %v175_v42  ;;  %v1748_v53 = vor.u32 %v1747_v45, %v1746_v44  ;;  %v287_v19 = vmul.f32 %v2000_v37, %v286_v54  ;;  %v1783_v20 = vpop.eup %1782  ;;  %v2047_v44 = vmul.f32 %v58_v51, %v58_v51 }
  0xa1   :  { %v188_v56 = vmul.f32 0.5, %v187_v49  ;;  %v302_v58 = vmul.f32 %v1775_v17, %v301_v52  ;;  %v97_v49 = vmul.f32 %v2016_v57, %v2016_v57 }
  0xa2   :  { %v177_v15 = vsub.f32 1.5, %v176_v50  ;;  %v1749_v59 = vsel %vm1743_vm12, %v1748_v53, %v348_v21  ;;  %v288_v18 = vmul.f32 0.5, %v287_v19  ;;  %vm122_vm12 = vweird.f32 %v1977_v7 }
  0xa3   :  { %v189_v60 = vsub.f32 1.5, %v188_v56  ;;  %v356_v61 = vsub.f32 %v348_v21, %v1749_v59  ;;  %v303_v0 = vmul.f32 %v302_v58, %v1969_v1  ;;  %v195_v21 = vand.u32 2147483648, %v1984_v13 }
  0xa4   :  { %v178_v63 = vmul.f32 %v1777_v24, %v177_v15  ;;  %v1736_v24 = vcvt.f32.s32 %v2023_v2  ;;  %v289_v34 = vsub.f32 1.5, %v288_v18  ;;  %v2060_v56 = vadd.f32 %v97_v49, %v2047_v44 }
  0xa5   :  { %v190_v4 = vmul.f32 %v1779_v31, %v189_v60  ;;  %v2025_v5 = vmul.f32 -6.2831855, %v356_v61  ;;  %v305_v11 = vsel %vm304_vm13, %v1969_v1, %v303_v0  ;;  %v333_v31 = vmul.f32 1.442695, %v327_v10 }
  0xa6   :  { %v179_v6 = vmul.f32 %v178_v63, %v1981_v12  ;;  %v308_v17 = vsel %vm306_vm14, %v307_v35, %v305_v11  ;;  %v290_v42 = vmul.f32 %v2000_v37, %v289_v34  ;;  %v1737_v43 = vcvt.s32.f32 %v1736_v24 }
  0xa7   :  { %v191_v14 = vmul.f32 %v190_v4, %v1984_v13  ;;  %v312_v22 = vmul.f32 0.4, %v308_v17  ;;  %v823_v23 = vand.u32 2147483647, %v2025_v5  ;;  %v826_v8 = vand.u32 2139095040, %v2025_v5 }
  0xa8   :  { %v181_v26 = vsel %vm180_vm0, %v1981_v12, %v179_v6  ;;  %1784 = vpow2.f32 %v333_v31  ;;  %v291_v52 = vmul.f32 %v290_v42, %v1967_v62  ;;  %v1739_v15 = vand.u32 2147483648, %v2023_v2 }
  0xa9   :  { %v193_v1 = vsel %vm192_vm15, %v1984_v13, %v191_v14  ;;  %v340_v29 = vmul.f32 %v1783_v20, %v312_v22  ;;  %v827_v30 = vshrl.u32 %v826_v8, 23  ;;  %v184_v33 = vsel %vm182_vm2, %v183_v27, %v181_v26 }
  0xaa   :  { %v196_v28 = vsel %vm194_vm1, %v195_v21, %v193_v1  ;;  %v830_v16 = vand.u32 8388607, %v823_v23  ;;  %v199_v13 = vmul.f32 0.00045067532, %v184_v33  ;;  %v293_v51 = vsel %vm292_vm4, %v1967_v62, %v291_v52  ;;  %vm123_vm1 = vmor %vm121_vm11, %vm122_vm12 }
  0xab   :  { %v200_v32 = vmul.f32 0.00045067532, %v196_v28  ;;  %v1701_v40 = vadd.s32 4294967169, %v827_v30  ;;  %v1734_v61 = vand.u32 2147483647, %v2023_v2  ;;  %1786 = vrsqrt.f32 %v2007_v48 }
  0xac   :  { %v207_v12 = vmul.f32 %v2005_v47, %v199_v13  ;;  %v831_v53 = vor.u32 8388608, %v830_v16  ;;  %v1738_v47 = vand.u32 2147483647, %v1737_v43  ;;  %v1857_v0 = vmov 683565275  }
  0xad   :  { %v208_v41 = vmul.f32 %v1994_v25, %v200_v32  ;;  %v833_v45 = vadd.s32 1, %v1701_v40  ;;  %v295_v25 = vand.u32 2147483648, %v1967_v62  ;;  %v1858_v35 = vmov 2475754826  }
  0xae   :  { %v2065_v59 = vshll.u32 %v831_v53, 8  ;;  %v1785_v63 = vpop.eup %1784  ;;  %v1740_v6 = vor.u32 %v1739_v15, %v1738_v47  ;;  %v1859_v11 = vmov 2131351028   ;;  %v1860_v18 = vmov 2102212464  }
  0xaf   :  { %v2052_v50 = vadd.f32 %v340_v29, %v208_v41  ;;  %vm834_vm3 = vcmp.gt.s32.totalorder %v833_v45, 0  ;;  %v296_v55 = vsel %vm294_vm5, %v295_v25, %v293_v51  ;;  %v1861_v22 = vmov 920167782  }
  0xb0   :  { %v835_v37 = vsel %vm834_vm3, %v833_v45, 0  ;;  %v311_v60 = vmul.f32 0.4, %v296_v55  ;;  %v2661_v1 = vmov 1326507024   ;;  %vm2090_vm7 = vcmp.lt.f32.partialorder %v1734_v61, 8388608.0 }
  0xb1   :  { %v837_v54 = vand.u32 31, %v835_v37  ;;  %v2068_v19 = vshrl.u32 %v835_v37, 5  ;;  %v1741_v16 = vsel %vm2090_vm7, %v1740_v6, %v2023_v2  ;;  %v872_v49 = vand.u32 65535, %v2065_v59 }
  0xb2   :  { %v339_v30 = vmul.f32 %v1785_v63, %v311_v60  ;;  %v873_v25 = vshrl.u32 %v2065_v59, 16  ;;  %1788 = vrsqrt.f32 %v2060_v56  ;;  %vm237_vm11 = vweird.f32 %v2007_v48 }
  0xb3   :  { %v2063_v58 = vsub.s32 32, %v837_v54  ;;  %v840_v62 = vshll.u32 %v1857_v0, %v837_v54  ;;  %v843_v4 = vshll.u32 %v1858_v35, %v837_v54  ;;  %v846_v17 = vshll.u32 %v1859_v11, %v837_v54 }
  0xb4   :  { %v849_v21 = vshll.u32 %v1860_v18, %v837_v54  ;;  %v852_v24 = vshll.u32 %v1861_v22, %v837_v54  ;;  %vm855_vm6 = vcmp.lt.s32.totalorder %v2068_v19, 1  ;;  %vm858_vm8 = vcmp.lt.s32.totalorder %v2068_v19, 4 }
  0xb5   :  { %v841_v10 = vshrl.u32 %v1858_v35, %v2063_v58  ;;  %v844_v14 = vshrl.u32 %v1859_v11, %v2063_v58  ;;  %v847_v20 = vshrl.u32 %v1860_v18, %v2063_v58  ;;  %v850_v8 = vshrl.u32 %v1861_v22, %v2063_v58 }
  0xb6   :  { %v853_v26 = vshrl.u32 %v2661_v1, %v2063_v58  ;;  %vm857_vm9 = vcmp.lt.s32.totalorder %v2068_v19, 3  ;;  %v2110_v42 = vadd.f32 %v339_v30, %v207_v12  ;;  %vm856_vm10 = vcmp.lt.s32.totalorder %v2068_v19, 2  ;;  %v2135_v30 = vpop.eup %1786 }
  0xb7   :  { %v2085_v27 = vor.u32 %v841_v10, %v840_v62  ;;  %v2087_v28 = vor.u32 %v844_v14, %v843_v4  ;;  %v848_v29 = vor.u32 %v847_v20, %v846_v17  ;;  %v851_v31 = vor.u32 %v850_v8, %v849_v21 }
  0xb8   :  { %v854_v32 = vor.u32 %v853_v26, %v852_v24  ;;  %v355_v12 = vsub.f32 %v2023_v2, %v1741_v16  ;;  %v120_v2 = vmul.f32 %v1977_v7, %v119_v38  ;;  %v839_v33 = vshrl.u32 %v1857_v0, %v2063_v58  ;;  %v2143_v16 = vpop.eup %1788 }
  0xb9   :  { %v863_v34 = vsel %vm855_vm6, %v2085_v27, %v2087_v28  ;;  %v867_v40 = vsel %vm855_vm6, %v2087_v28, %v848_v29  ;;  %v864_v13 = vsel %vm858_vm8, %v851_v31, 920167782  ;;  %v860_v38 = vsel %vm858_vm8, %v848_v29, 2102212464 }
  0xba   :  { %v868_v41 = vsel %vm858_vm8, %v854_v32, 1326507024  ;;  %v865_v43 = vsel %vm857_vm9, %v848_v29, %v864_v13  ;;  %v2127_v63 = vmul.f32 -6.2831855, %v355_v12  ;;  %v859_v29 = vsel %vm855_vm6, %v839_v33, %v2085_v27 }
  0xbb   :  { %v869_v45 = vsel %vm857_vm9, %v851_v31, %v868_v41  ;;  %v866_v52 = vsel %vm856_vm10, %v863_v34, %v865_v43  ;;  %vm238_vm12 = vweird.f32 %v2135_v30 }
  0xbc   :  { %v870_v53 = vsel %vm856_vm10, %v867_v40, %v869_v45  ;;  %v896_v47 = vand.u32 65535, %v866_v52  ;;  %v897_v54 = vshrl.u32 %v866_v52, 16  ;;  %v672_v9 = vand.u32 2139095040, %v2127_v63 }
  0xbd   :  { %v874_v37 = vand.u32 65535, %v870_v53  ;;  %v875_v51 = vshrl.u32 %v870_v53, 16  ;;  %v669_v12 = vand.u32 2147483647, %v2127_v63 }
  0xbe   :  { %v899_v60 = vmul.u32 %v897_v54, %v872_v49  ;;  %v900_v61 = vmul.u32 %v896_v47, %v873_v25  ;;  %v898_v10 = vmul.u32 %v896_v47, %v872_v49  ;;  %v901_v14 = vmul.u32 %v897_v54, %v873_v25 }
  0xbf   :  { %v877_v55 = vmul.u32 %v875_v51, %v872_v49  ;;  %v878_v15 = vmul.u32 %v874_v37, %v873_v25  ;;  %v876_v62 = vmul.u32 %v874_v37, %v872_v49  ;;  %v879_v6 = vmul.u32 %v875_v51, %v873_v25 }
  0xc0   :  { %v902_v17 = vshll.u32 %v899_v60, 16  ;;  %v904_v8 = vshll.u32 %v900_v61, 16  ;;  %v673_v45 = vshrl.u32 %v672_v9, 23  ;;  %v861_v49 = vsel %vm857_vm9, %v2087_v28, %v860_v38 }
  0xc1   :  { %v880_v4 = vshll.u32 %v877_v55, 16  ;;  %v882_v20 = vshll.u32 %v878_v15, 16  ;;  %v881_v13 = vshrl.u32 %v877_v55, 16  ;;  %v903_v58 = vshrl.u32 %v899_v60, 16 }
  0xc2   :  { %vm906_vm14 = vc.u32 %v898_v10, %v902_v17  ;;  %v908_v26 = vadd.s32 %v902_v17, %v898_v10  ;;  %v883_v53 = vshrl.u32 %v878_v15, 16  ;;  %v1698_v37 = vadd.s32 4294967169, %v673_v45 }
  0xc3   :  { %vm884_vm13 = vc.u32 %v876_v62, %v880_v4  ;;  %v886_v21 = vadd.s32 %v880_v4, %v876_v62  ;;  %v907_v32 = vsel %vm906_vm14, 1, %v1856_v3  ;;  %v905_v51 = vshrl.u32 %v900_v61, 16 }
  0xc4   :  { %v885_v24 = vsel %vm884_vm13, 1, %v1856_v3  ;;  %v909_v40 = vadd.s32 %v907_v32, %v901_v14  ;;  %vm910_vm0 = vc.u32 %v908_v26, %v904_v8  ;;  %v2159_v27 = vadd.s32 %v908_v26, %v904_v8 }
  0xc5   :  { %v887_v31 = vadd.s32 %v885_v24, %v879_v6  ;;  %vm888_vm15 = vc.u32 %v886_v21, %v882_v20  ;;  %v911_v43 = vsel %vm910_vm0, 1, %v1856_v3  ;;  %v679_v55 = vadd.s32 1, %v1698_v37 }
  0xc6   :  { %v889_v34 = vsel %vm888_vm15, 1, %v1856_v3  ;;  %v913_v52 = vadd.s32 %v911_v43, %v909_v40  ;;  %v232_v28 = vmul.f32 %v2135_v30, %v2007_v48  ;;  %v862_v15 = vsel %vm856_vm10, %v859_v29, %v861_v49 }
  0xc7   :  { %v891_v41 = vadd.s32 %v889_v34, %v887_v31  ;;  %v2166_v62 = vsel %vm123_vm1, %v1977_v7, %v120_v2  ;;  %v676_v61 = vand.u32 8388607, %v669_v12  ;;  %vm680_vm3 = vcmp.gt.s32.totalorder %v679_v55, 0 }
  0xc8   :  { %v914_v47 = vadd.s32 %v913_v52, %v903_v58  ;;  %v681_v6 = vsel %vm680_vm3, %v679_v55, 0  ;;  %v916_v10 = vmul.u32 %v2065_v59, %v862_v15  ;;  %v233_v17 = vmul.f32 %v2135_v30, %v232_v28 }
  0xc9   :  { %v892_v25 = vadd.s32 %v891_v41, %v881_v13  ;;  %v683_v14 = vand.u32 31, %v681_v6  ;;  %v146_v19 = vmul.f32 %v2166_v62, %v1963_v46  ;;  %v106_v7 = vmul.f32 %v2143_v16, %v2060_v56 }
  0xca   :  { %v915_v60 = vadd.s32 %v914_v47, %v905_v51  ;;  %v677_v21 = vor.u32 8388608, %v676_v61  ;;  %v2180_v24 = vshrl.u32 %v681_v6, 5  ;;  %v2234_v6 = vmul.f32 0.5, %v233_v17 }
  0xcb   :  { %v2157_v54 = vadd.s32 %v892_v25, %v883_v53  ;;  %v2178_v8 = vsub.s32 32, %v683_v14  ;;  %v686_v26 = vshll.u32 %v1857_v0, %v683_v14  ;;  %v689_v59 = vshll.u32 %v1858_v35, %v683_v14 }
  0xcc   :  { %v919_v4 = vadd.s32 1, %v915_v60  ;;  %v692_v9 = vshll.u32 %v1859_v11, %v683_v14  ;;  %v695_v32 = vshll.u32 %v1860_v18, %v683_v14  ;;  %v698_v40 = vshll.u32 %v1861_v22, %v683_v14 }
  0xcd   :  { %vm918_vm2 = vc.u32 %v2157_v54, %v2159_v27  ;;  %v687_v46 = vshrl.u32 %v1858_v35, %v2178_v8  ;;  %v690_v31 = vshrl.u32 %v1859_v11, %v2178_v8  ;;  %v693_v33 = vshrl.u32 %v1860_v18, %v2178_v8 }
  0xce   :  { %v920_v20 = vsel %vm918_vm2, %v919_v4, %v915_v60  ;;  %v696_v34 = vshrl.u32 %v1861_v22, %v2178_v8  ;;  %v699_v13 = vshrl.u32 %v2661_v1, %v2178_v8  ;;  %v2197_v41 = vmul.f32 935483.9, %v146_v19  ;;  %vm239_vm2 = vmor %vm237_vm11, %vm238_vm12 }
  0xcf   :  { %v921_v2 = vadd.s32 %v920_v20, %v916_v10  ;;  %v2201_v45 = vor.u32 %v687_v46, %v686_v26  ;;  %v2203_v29 = vor.u32 %v690_v31, %v689_v59  ;;  %v2205_v49 = vor.u32 %v693_v33, %v692_v9 }
  0xd0   :  { %v697_v58 = vor.u32 %v696_v34, %v695_v32  ;;  %v700_v52 = vor.u32 %v699_v13, %v698_v40  ;;  %vm701_vm4 = vcmp.lt.s32.totalorder %v2180_v24, 1  ;;  %v107_v53 = vmul.f32 %v2143_v16, %v106_v7 }
  0xd1   :  { %v922_v38 = vadd.s32 536870912, %v921_v2  ;;  %vm704_vm5 = vcmp.lt.s32.totalorder %v2180_v24, 4  ;;  %v709_v37 = vsel %vm701_vm4, %v2201_v45, %v2203_v29  ;;  %vm703_vm6 = vcmp.lt.s32.totalorder %v2180_v24, 3 }
  0xd2   :  { %v710_v51 = vsel %vm704_vm5, %v697_v58, 920167782  ;;  %v714_v47 = vsel %vm704_vm5, %v700_v52, 1326507024  ;;  %v2220_v55 = vshll.u32 %v677_v21, 8  ;;  %vm702_vm7 = vcmp.lt.s32.totalorder %v2180_v24, 2 }
  0xd3   :  { %v2199_v43 = vshrl.u32 %v922_v38, 30  ;;  %v711_v15 = vsel %vm703_vm6, %v2205_v49, %v710_v51  ;;  %v713_v60 = vsel %vm701_vm4, %v2203_v29, %v2205_v49  ;;  %v715_v4 = vsel %vm703_vm6, %v697_v58, %v714_v47 }
  0xd4   :  { %v712_v61 = vsel %vm702_vm7, %v709_v37, %v711_v15  ;;  %v2236_v14 = vmul.f32 0.5, %v107_v53  ;;  %v716_v19 = vsel %vm702_vm7, %v713_v60, %v715_v4  ;;  %v718_v26 = vand.u32 65535, %v2220_v55 }
  0xd5   :  { %v924_v25 = vshll.u32 %v2199_v43, 30  ;;  %v742_v20 = vand.u32 65535, %v712_v61  ;;  %v743_v7 = vshrl.u32 %v712_v61, 16  ;;  %v719_v9 = vshrl.u32 %v2220_v55, 16 }
  0xd6   :  { %v720_v38 = vand.u32 65535, %v716_v19  ;;  %v721_v17 = vshrl.u32 %v716_v19, 16  ;;  %v235_v46 = vsub.f32 1.5, %v2234_v6  ;;  %v1726_v32 = vand.u32 2147483647, %v2197_v41 }
  0xd7   :  { %v925_v28 = vsub.s32 %v921_v2, %v924_v25  ;;  %v1728_v2 = vcvt.f32.s32 %v2197_v41  ;;  %v745_v31 = vmul.u32 %v743_v7, %v718_v26  ;;  %v109_v33 = vsub.f32 1.5, %v2236_v14 }
  0xd8   :  { %v917_v34 = vadd.s32 %v2159_v27, %v2157_v54  ;;  %v2248_v13 = vmul.u32 %v742_v20, %v719_v9  ;;  %v723_v58 = vmul.u32 %v721_v17, %v718_v26  ;;  %v724_v52 = vmul.u32 %v720_v38, %v719_v9 }
  0xd9   :  { %vm926_vm8 = vcmp.lt.s32.totalorder %v925_v28, 0  ;;  %v927_v10 = vsub.s32 0, %v925_v28  ;;  %v1729_v53 = vcvt.s32.f32 %v1728_v2  ;;  %v1731_v25 = vand.u32 2147483648, %v2197_v41 }
  0xda   :  { %v744_v37 = vmul.u32 %v742_v20, %v718_v26  ;;  %v747_v51 = vmul.u32 %v743_v7, %v719_v9  ;;  %v748_v47 = vshll.u32 %v745_v31, 16  ;;  %v722_v60 = vmul.u32 %v720_v38, %v718_v26 }
  0xdb   :  { %v928_v21 = vsel %vm926_vm8, %v927_v10, %v925_v28  ;;  %v725_v61 = vmul.u32 %v721_v17, %v719_v9  ;;  %v726_v4 = vshll.u32 %v723_v58, 16  ;;  %vm2251_vm10 = vcmp.lt.f32.partialorder %v1726_v32, 8388608.0 }
  0xdc   :  { %v929_v59 = vclz %v928_v21  ;;  %v728_v10 = vshll.u32 %v724_v52, 16  ;;  %v750_v19 = vshll.u32 %v2248_v13, 16  ;;  %vm752_vm14 = vc.u32 %v744_v37, %v748_v47 }
  0xdd   :  { %vm730_vm13 = vc.u32 %v722_v60, %v726_v4  ;;  %v732_v7 = vadd.s32 %v726_v4, %v722_v60  ;;  %v754_v38 = vadd.s32 %v748_v47, %v744_v37  ;;  %v685_v1 = vshrl.u32 %v1857_v0, %v2178_v8 }
  0xde   :  { %v1702_v40 = vadd.s32 4294967294, %v929_v59  ;;  %v731_v26 = vsel %vm730_vm13, 1, %v1856_v3  ;;  %v753_v59 = vsel %vm752_vm14, 1, %v1856_v3  ;;  %v1730_v47 = vand.u32 2147483647, %v1729_v53 }
  0xdf   :  { %v733_v9 = vadd.s32 %v731_v26, %v725_v61  ;;  %vm734_vm15 = vc.u32 %v732_v7, %v728_v10  ;;  %v755_v17 = vadd.s32 %v753_v59, %v747_v51  ;;  %vm756_vm0 = vc.u32 %v754_v38, %v750_v19 }
  0xe0   :  { %vm1703_vm9 = vcmp.lt.s32.totalorder %v1702_v40, 0  ;;  %v705_v37 = vsel %vm701_vm4, %v685_v1, %v2201_v45  ;;  %v757_v51 = vsel %vm756_vm0, 1, %v1856_v3  ;;  %v729_v61 = vshrl.u32 %v724_v52, 16 }
  0xe1   :  { %v932_v15 = vsel %vm1703_vm9, 0, %v1702_v40  ;;  %v749_v8 = vshrl.u32 %v745_v31, 16  ;;  %v236_v7 = vmul.f32 %v2135_v30, %v235_v46  ;;  %v751_v1 = vshrl.u32 %v2248_v13, 16 }
  0xe2   :  { %v933_v54 = vsub.s32 32, %v932_v15  ;;  %v937_v27 = vsub.s32 4294967266, %v932_v15  ;;  %v934_v20 = vshll.u32 %v925_v28, %v932_v15  ;;  %v735_v28 = vsel %vm734_vm15, 1, %v1856_v3 }
  0xe3   :  { %v727_v15 = vshrl.u32 %v723_v58, 16  ;;  %v737_v60 = vadd.s32 %v735_v28, %v733_v9  ;;  %v1732_v58 = vor.u32 %v1731_v25, %v1730_v47  ;;  %vm112_vm1 = vweird.f32 %v2143_v16 }
  0xe4   :  { %v935_v2 = vshrl.u32 %v917_v34, %v933_v54  ;;  %v938_v21 = vadd.s32 127, %v937_v27  ;;  %v706_v34 = vsel %vm704_vm5, %v2205_v49, 2102212464  ;;  %v759_v27 = vadd.s32 %v757_v51, %v755_v17 }
  0xe5   :  { %v738_v54 = vadd.s32 %v737_v60, %v727_v15  ;;  %v707_v49 = vsel %vm703_vm6, %v2203_v29, %v706_v34  ;;  %v2278_v53 = vadd.s32 %v754_v38, %v750_v19  ;;  %v1733_v31 = vsel %vm2251_vm10, %v1732_v58, %v2197_v41 }
  0xe6   :  { %v936_v32 = vor.u32 %v935_v2, %v934_v20  ;;  %v939_v40 = vshll.u32 %v938_v21, 23  ;;  %v760_v45 = vadd.s32 %v759_v27, %v749_v8  ;;  %v110_v29 = vmul.f32 %v2143_v16, %v109_v33 }
  0xe7   :  { %v2274_v2 = vadd.s32 %v738_v54, %v729_v61  ;;  %v708_v46 = vsel %vm702_vm7, %v705_v37, %v707_v49  ;;  %v354_v25 = vsub.f32 %v2197_v41, %v1733_v31  ;;  %v209_v19 = vmul.f32 1361049.1, %v2016_v57 }
  0xe8   :  { %v940_v4 = vor.u32 4788187, %v939_v40  ;;  %v943_v20 = vcvt.s32.f32 %v936_v32  ;;  %v761_v13 = vadd.s32 %v760_v45, %v751_v1  ;;  %v947_v6 = vsub.s32 4, %v2199_v43 }
  0xe9   :  { %vm764_vm3 = vc.u32 %v2274_v2, %v2278_v53  ;;  %vm111_vm4 = vweird.f32 %v2060_v56  ;;  %vm825_vm5 = vcmp.lt.s32.totalorder %v2025_v5, 0  ;;  %v2299_v14 = vmul.f32 -6.2831855, %v354_v25 }
  0xea   :  { %v941_v10 = vand.u32 2147483647, %v940_v4  ;;  %v765_v48 = vadd.s32 1, %v761_v13  ;;  %v2302_v24 = vsel %vm239_vm2, %v2135_v30, %v236_v7  ;;  %vm113_vm6 = vmor %vm111_vm4, %vm112_vm1  ;;  %vm2308_vm7 = vcmp.le.f32.partialorder %v823_v23, 0.7853982 }
  0xeb   :  { %v762_v26 = vmul.u32 %v2220_v55, %v708_v46  ;;  %v2314_v59 = vsel %vm113_vm6, %v2143_v16, %v110_v29  ;;  %1790 = vrsqrt.f32 %v2166_v62  ;;  %v948_v38 = vsel %vm825_vm5, %v947_v6, %v2199_v43 }
  0xec   :  { %v944_v52 = vmul.f32 %v943_v20, %v941_v10  ;;  %v766_v9 = vsel %vm764_vm3, %v765_v48, %v761_v13  ;;  %v518_v32 = vand.u32 2139095040, %v2299_v14  ;;  %v314_v40 = vsub.f32 0.0, %v1958_v39 }
  0xed   :  { %v767_v23 = vadd.s32 %v766_v9, %v762_v26  ;;  %v213_v28 = vmul.f32 %v209_v19, %v209_v19  ;;  %1792 = vrsqrt.f32 %v2302_v24  ;;  %v318_v60 = vmul.f32 %v2302_v24, %v2302_v24 }
  0xee   :  { %v945_v21 = vxor.u32 2147483648, %v944_v52  ;;  %v519_v15 = vshrl.u32 %v518_v32, 23  ;;  %v145_v4 = vmul.f32 %v2314_v59, %v2060_v56  ;;  %v950_v43 = vsel %vm2308_vm7, 0, %v948_v38 }
  0xef   :  { %v768_v16 = vadd.s32 536870912, %v767_v23  ;;  %v2334_v54 = vadd.f32 1.0, %v213_v28  ;;  %v2337_v20 = vmul.f32 %v318_v60, %v314_v40  ;;  %v1590_v56 = vadd.s32 3, %v950_v43 }
  0xf0   :  { %v946_v33 = vsel %vm825_vm5, %v945_v21, %v944_v52  ;;  %v1695_v39 = vadd.s32 4294967169, %v519_v15  ;;  %v2339_v49 = vmul.f32 935483.9, %v145_v4  ;;  %v515_v52 = vand.u32 2147483647, %v2299_v14 }
  0xf1   :  { %v949_v30 = vsel %vm2308_vm7, %v2025_v5, %v946_v33  ;;  %v2330_v47 = vshrl.u32 %v768_v16, 30  ;;  %v2332_v61 = vpop.eup %1790  ;;  %1794 = vrsqrt.f32 %v2334_v54  ;;  %v967_v29 = vand.u32 3, %v950_v43 }
  0xf2   :  { %v951_v17 = vmul.f32 %v949_v30, %v949_v30  ;;  %v525_v58 = vadd.s32 1, %v1695_v39  ;;  %v2349_v46 = vmul.f32 %v2332_v61, %v2166_v62  ;;  %v1720_v21 = vcvt.f32.s32 %v2339_v49 }
  0xf3   :  { %v770_v10 = vshll.u32 %v2330_v47, 30  ;;  %v2344_v31 = vpop.eup %1792  ;;  %vm966_vm10 = vweird.f32 %v2025_v5  ;;  %v1591_v6 = vand.u32 3, %v1590_v56  ;;  %v522_v9 = vand.u32 8388607, %v515_v52 }
  0xf4   :  { %v952_v55 = vmul.f32 -0.001358992, %v951_v17  ;;  %v959_v34 = vmul.f32 -0.00019511016, %v951_v17  ;;  %vm526_vm8 = vcmp.gt.s32.totalorder %v525_v58, 0  ;;  %vm968_vm11 = vcmp.lt.s32.totalorder %v967_v29, 2 }
  0xf5   :  { %v2341_v45 = vsub.s32 %v767_v23, %v770_v10  ;;  %v527_v48 = vsel %vm526_vm8, %v525_v58, 0  ;;  %vm969_vm12 = vcmp.eq.s32.totalorder %v967_v29, 0  ;;  %vm972_vm13 = vcmp.eq.s32.totalorder %v967_v29, 2 }
  0xf6   :  { %v953_v37 = vadd.f32 0.041655596, %v952_v55  ;;  %v960_v51 = vadd.f32 0.008332121, %v959_v34  ;;  %v529_v40 = vand.u32 31, %v527_v48  ;;  %vm1592_vm14 = vcmp.lt.s32.totalorder %v1591_v6, 2 }
  0xf7   :  { %vm772_vm9 = vcmp.lt.s32.totalorder %v2341_v45, 0  ;;  %v773_v19 = vsub.s32 0, %v2341_v45  ;;  %v2362_v28 = vpop.eup %1794  ;;  %vm1593_vm15 = vcmp.eq.s32.totalorder %v1591_v6, 0  ;;  %vm1596_vm0 = vcmp.eq.s32.totalorder %v1591_v6, 2 }
  0xf8   :  { %v954_v8 = vmul.f32 %v953_v37, %v951_v17  ;;  %v961_v27 = vmul.f32 %v960_v51, %v951_v17  ;;  %v763_v16 = vadd.s32 %v2278_v53, %v2274_v2  ;;  %v793_v15 = vsub.s32 4, %v2330_v47 }
  0xf9   :  { %v774_v26 = vsel %vm772_vm9, %v773_v19, %v2341_v45  ;;  %v523_v60 = vor.u32 8388608, %v522_v9  ;;  %vm671_vm1 = vcmp.lt.s32.totalorder %v2127_v63, 0  ;;  %v530_v43 = vsub.s32 32, %v529_v40 }
  0xfa   :  { %v955_v7 = vadd.f32 -0.4999988, %v954_v8  ;;  %v962_v1 = vadd.f32 -0.16666654, %v961_v27  ;;  %v775_v38 = vclz %v774_v26  ;;  %v532_v53 = vshll.u32 %v1857_v0, %v529_v40 }
  0xfb   :  { %v533_v19 = vshrl.u32 %v1858_v35, %v530_v43  ;;  %vm2387_vm3 = vcmp.le.f32.partialorder %v669_v12, 0.7853982  ;;  %v539_v26 = vshrl.u32 %v1860_v18, %v530_v43  ;;  %v2398_v12 = vshll.u32 %v523_v60, 8 }
  0xfc   :  { %v956_v13 = vmul.f32 %v955_v7, %v951_v17  ;;  %v963_v25 = vmul.f32 %v962_v1, %v951_v17  ;;  %v2360_v17 = vmul.f32 %v2344_v31, %v2302_v24  ;;  %v1699_v55 = vadd.s32 4294967294, %v775_v38 }
  0xfe   :  { %v957_v41 = vadd.f32 1.0, %v956_v13  ;;  %v964_v33 = vadd.f32 1.0, %v963_v25  ;;  %vm1700_vm2 = vcmp.lt.s32.totalorder %v1699_v55, 0 }
  0xff   :  { %v778_v8 = vsel %vm1700_vm2, 0, %v1699_v55 }
 0x100   :  { %v965_v23 = vmul.f32 %v964_v33, %v949_v30  ;;  %v973_v32 = vxor.u32 2147483648, %v957_v41  ;;  %v2368_v30 = vshrl.u32 %v527_v48, 5  ;;  %v779_v2 = vsub.s32 32, %v778_v8 }
 0x101   :  { %v780_v7 = vshll.u32 %v2341_v45, %v778_v8  ;;  %v783_v1 = vsub.s32 4294967266, %v778_v8  ;;  %v535_v48 = vshll.u32 %v1858_v35, %v529_v40  ;;  %v538_v33 = vshll.u32 %v1859_v11, %v529_v40 }
 0x102   :  { %v970_v34 = vxor.u32 2147483648, %v965_v23  ;;  %v974_v4 = vsel %vm972_vm13, %v973_v32, %v965_v23  ;;  %v1598_v39 = vsel %vm1596_vm0, %v973_v32, %v965_v23  ;;  %v781_v29 = vshrl.u32 %v763_v16, %v779_v2 }
 0x103   :  { %v784_v6 = vadd.s32 127, %v783_v1  ;;  %v541_v23 = vshll.u32 %v1860_v18, %v529_v40  ;;  %v542_v32 = vshrl.u32 %v1861_v22, %v530_v43  ;;  %v540_v55 = vor.u32 %v539_v26, %v538_v33 }
 0x104   :  { %v971_v37 = vsel %vm969_vm12, %v957_v41, %v970_v34  ;;  %v1595_v51 = vsel %vm1593_vm15, %v957_v41, %v970_v34  ;;  %v536_v41 = vshrl.u32 %v1859_v11, %v530_v43  ;;  %v782_v45 = vor.u32 %v781_v29, %v780_v7 }
 0x105   :  { %v975_v27 = vsel %vm968_vm11, %v971_v37, %v974_v4  ;;  %v1599_v10 = vsel %vm1592_vm14, %v1595_v51, %v1598_v39  ;;  %v785_v9 = vshll.u32 %v784_v6, 23  ;;  %v544_v34 = vshll.u32 %v1861_v22, %v529_v40 }
 0x106   :  { %v976_v56 = vsel %vm966_vm10, nan, %v975_v27  ;;  %v1600_v58 = vsel %vm966_vm10, nan, %v1599_v10  ;;  %v2392_v38 = vor.u32 %v536_v41, %v535_v48  ;;  %v2671_v16 = vmov 1326507024  }
 0x107   :  { %v980_v13 = vmul.f32 %v976_v56, %v2052_v50  ;;  %v1604_v25 = vmul.f32 %v1600_v58, %v2052_v50  ;;  %v534_v50 = vor.u32 %v533_v19, %v532_v53  ;;  %v545_v4 = vshrl.u32 %v2671_v16, %v530_v43 }
 0x108   :  { %v786_v37 = vor.u32 4788187, %v785_v9  ;;  %v794_v51 = vsel %vm671_vm1, %v793_v15, %v2330_v47  ;;  %v543_v39 = vor.u32 %v542_v32, %v541_v23  ;;  %vm547_vm4 = vcmp.lt.s32.totalorder %v2368_v30, 1 }
 0x109   :  { %1621 = vmatpush.msra.mxu0 %v980_v13  ;;  %1641 = vmatpush.msra.mxu1 %v1604_v25  ;;  %v546_v8 = vor.u32 %v545_v4, %v544_v34  ;;  %vm549_vm5 = vcmp.lt.s32.totalorder %v2368_v30, 3  ;;  %vm550_vm6 = vcmp.lt.s32.totalorder %v2368_v30, 4  ;;  %v555_v40 = vsel %vm547_vm4, %v534_v50, %v2392_v38 }
 0x10a   :  { %v787_v27 = vand.u32 2147483647, %v786_v37  ;;  %v789_v60 = vcvt.s32.f32 %v782_v45  ;;  %v556_v10 = vsel %vm550_vm6, %v543_v39, 920167782  ;;  %v559_v47 = vsel %vm547_vm4, %v2392_v38, %v540_v55 }
 0x10b   :  { %vm548_vm7 = vcmp.lt.s32.totalorder %v2368_v30, 2  ;;  %v557_v15 = vsel %vm549_vm5, %v540_v55, %v556_v10  ;;  %v560_v2 = vsel %vm550_vm6, %v546_v8, 1326507024  ;;  %v564_v53 = vand.u32 65535, %v2398_v12 }
 0x10c   :  { %v790_v56 = vmul.f32 %v789_v60, %v787_v27  ;;  %v2422_v58 = vsel %vm2387_vm3, 0, %v794_v51  ;;  %v558_v7 = vsel %vm548_vm7, %v555_v40, %v557_v15  ;;  %v561_v1 = vsel %vm549_vm5, %v543_v39, %v560_v2 }
 0x10d   :  { %v562_v13 = vsel %vm548_vm7, %v559_v47, %v561_v1  ;;  %v565_v25 = vshrl.u32 %v2398_v12, 16  ;;  %v588_v29 = vand.u32 65535, %v558_v7  ;;  %v589_v19 = vshrl.u32 %v558_v7, 16 }
 0x10e   :  { %v791_v6 = vxor.u32 2147483648, %v790_v56  ;;  %v531_v48 = vshrl.u32 %v1857_v0, %v530_v43  ;;  %v566_v41 = vand.u32 65535, %v562_v13  ;;  %v567_v33 = vshrl.u32 %v562_v13, 16 }
 0x10f   :  { %v1435_v45 = vadd.s32 3, %v2422_v58  ;;  %v2435_v26 = vmul.f32 %v2332_v61, %v2349_v46  ;;  %v275_v9 = vmul.f32 %v2344_v31, %v2360_v17  ;;  %v591_v23 = vmul.u32 %v589_v19, %v564_v53 }
 0x110   :  { %v792_v32 = vsel %vm671_vm1, %v791_v6, %v790_v56  ;;  %v551_v34 = vsel %vm547_vm4, %v531_v48, %v534_v50  ;;  %v569_v4 = vmul.u32 %v567_v33, %v564_v53  ;;  %v570_v43 = vmul.u32 %v566_v41, %v565_v25 }
 0x111   :  { %v795_v37 = vsel %vm2387_vm3, %v2127_v63, %v792_v32  ;;  %v590_v51 = vmul.u32 %v588_v29, %v564_v53  ;;  %v592_v39 = vmul.u32 %v588_v29, %v565_v25  ;;  %v594_v46 = vshll.u32 %v591_v23, 16 }
 0x112   :  { %v797_v8 = vmul.f32 %v795_v37, %v795_v37  ;;  %v552_v17 = vsel %vm550_vm6, %v540_v55, 2102212464  ;;  %v568_v40 = vmul.u32 %v566_v41, %v564_v53  ;;  %v572_v27 = vshll.u32 %v569_v4, 16 }
 0x113   :  { %v571_v60 = vmul.u32 %v567_v33, %v565_v25  ;;  %v574_v10 = vshll.u32 %v570_v43, 16  ;;  %v593_v47 = vmul.u32 %v589_v19, %v565_v25  ;;  %vm598_vm8 = vc.u32 %v590_v51, %v594_v46 }
 0x114   :  { %v798_v50 = vmul.f32 -0.001358992, %v797_v8  ;;  %v805_v15 = vmul.f32 -0.00019511016, %v797_v8  ;;  %vm576_vm9 = vc.u32 %v568_v40, %v572_v27  ;;  %v578_v2 = vadd.s32 %v572_v27, %v568_v40 }
 0x115   :  { %v577_v5 = vsel %vm576_vm9, 1, %v1856_v3  ;;  %v596_v56 = vshll.u32 %v592_v39, 16  ;;  %v599_v7 = vsel %vm598_vm8, 1, %v1856_v3  ;;  %v600_v1 = vadd.s32 %v594_v46, %v590_v51 }
 0x116   :  { %v799_v13 = vadd.f32 0.041655596, %v798_v50  ;;  %v806_v29 = vadd.f32 0.008332121, %v805_v15  ;;  %v579_v6 = vadd.s32 %v577_v5, %v571_v60  ;;  %vm580_vm10 = vc.u32 %v578_v2, %v574_v10 }
 0x117   :  { %v573_v55 = vshrl.u32 %v569_v4, 16  ;;  %v581_v53 = vsel %vm580_vm10, 1, %v1856_v3  ;;  %v601_v48 = vadd.s32 %v599_v7, %v593_v47  ;;  %vm602_vm11 = vc.u32 %v600_v1, %v596_v56 }
 0x118   :  { %v800_v25 = vmul.f32 %v799_v13, %v797_v8  ;;  %v807_v19 = vmul.f32 %v806_v29, %v797_v8  ;;  %v583_v41 = vadd.s32 %v581_v53, %v579_v6  ;;  %v603_v33 = vsel %vm602_vm11, 1, %v1856_v3 }
 0x119   :  { %v553_v32 = vsel %vm549_vm5, %v2392_v38, %v552_v17  ;;  %v575_v40 = vshrl.u32 %v570_v43, 16  ;;  %v595_v51 = vshrl.u32 %v591_v23, 16  ;;  %v605_v46 = vadd.s32 %v603_v33, %v601_v48 }
 0x11a   :  { %v801_v27 = vadd.f32 -0.4999988, %v800_v25  ;;  %v808_v60 = vadd.f32 -0.16666654, %v807_v19  ;;  %v584_v10 = vadd.s32 %v583_v41, %v573_v55  ;;  %v1721_v4 = vcvt.s32.f32 %v1720_v21 }
 0x11b   :  { %v597_v47 = vshrl.u32 %v592_v39, 16  ;;  %v2457_v50 = vadd.s32 %v600_v1, %v596_v56  ;;  %v606_v15 = vadd.s32 %v605_v46, %v595_v51  ;;  %v1718_v2 = vand.u32 2147483647, %v2339_v49 }
 0x11c   :  { %v802_v5 = vmul.f32 %v801_v27, %v797_v8  ;;  %v809_v7 = vmul.f32 %v808_v60, %v797_v8  ;;  %v2460_v13 = vadd.s32 %v584_v10, %v575_v40  ;;  %v1722_v38 = vand.u32 2147483647, %v1721_v4 }
 0x11d   :  { %v813_v23 = vand.u32 3, %v2422_v58  ;;  %v554_v43 = vsel %vm548_vm7, %v551_v34, %v553_v32  ;;  %v607_v17 = vadd.s32 %v606_v15, %v597_v47  ;;  %v1723_v29 = vand.u32 2147483648, %v2339_v49 }
 0x11e   :  { %v803_v21 = vadd.f32 1.0, %v802_v5  ;;  %v810_v39 = vadd.f32 1.0, %v809_v7  ;;  %v1436_v56 = vand.u32 3, %v1435_v45  ;;  %vm610_vm12 = vc.u32 %v2460_v13, %v2457_v50 }
 0x11f   :  { %v164_v1 = vmul.f32 0.5, %v2435_v26  ;;  %v276_v8 = vmul.f32 0.5, %v275_v9  ;;  %v611_v6 = vadd.s32 1, %v607_v17  ;;  %v1724_v55 = vor.u32 %v1723_v29, %v1722_v38 }
 0x120   :  { %v811_v53 = vmul.f32 %v810_v39, %v795_v37  ;;  %v819_v48 = vxor.u32 2147483648, %v803_v21  ;;  %v608_v58 = vmul.u32 %v2398_v12, %v554_v43  ;;  %vm1719_vm13 = vcmp.lt.f32.partialorder %v1718_v2, 8388608.0 }
 0x121   :  { %vm814_vm14 = vcmp.lt.s32.totalorder %v813_v23, 2  ;;  %vm815_vm15 = vcmp.eq.s32.totalorder %v813_v23, 0  ;;  %v612_v30 = vsel %vm610_vm12, %v611_v6, %v607_v17  ;;  %v1725_v34 = vsel %vm1719_vm13, %v1724_v55, %v2339_v49 }
 0x122   :  { %v816_v25 = vxor.u32 2147483648, %v811_v53  ;;  %vm818_vm0 = vcmp.eq.s32.totalorder %v813_v23, 2  ;;  %vm1437_vm1 = vcmp.lt.s32.totalorder %v1436_v56, 2  ;;  %v613_v45 = vadd.s32 %v612_v30, %v608_v58 }
 0x123   :  { %v820_v19 = vsel %vm818_vm0, %v819_v48, %v811_v53  ;;  %vm1438_vm2 = vcmp.eq.s32.totalorder %v1436_v56, 0  ;;  %vm1441_vm3 = vcmp.eq.s32.totalorder %v1436_v56, 2  ;;  %v353_v26 = vsub.f32 %v2339_v49, %v1725_v34 }
 0x124   :  { %v817_v9 = vsel %vm815_vm15, %v803_v21, %v816_v25  ;;  %v1440_v37 = vsel %vm1438_vm2, %v803_v21, %v816_v25  ;;  %v1443_v41 = vsel %vm1441_vm3, %v819_v48, %v811_v53  ;;  %v614_v33 = vadd.s32 536870912, %v613_v45 }
 0x125   :  { %vm812_vm4 = vweird.f32 %v2127_v63  ;;  %v821_v12 = vsel %vm814_vm14, %v817_v9, %v820_v19  ;;  %v1444_v32 = vsel %vm1437_vm1, %v1440_v37, %v1443_v41  ;;  %v2474_v40 = vmul.f32 -6.2831855, %v353_v26 }
 0x126   :  { %v222_v51 = vmul.f32 %v2362_v28, %v2334_v54  ;;  %v822_v46 = vsel %vm812_vm4, nan, %v821_v12  ;;  %v1445_v27 = vsel %vm812_vm4, nan, %v1444_v32  ;;  %v2478_v60 = vshrl.u32 %v614_v33, 30 }
 0x127   :  { %v979_v49 = vmul.f32 %v822_v46, %v2110_v42  ;;  %v1603_v10 = vmul.f32 %v1445_v27, %v2110_v42  ;;  %v165_v4 = vsub.f32 1.5, %v164_v1  ;;  %v277_v47 = vsub.f32 1.5, %v276_v8 }
 0x128   :  { %v616_v63 = vshll.u32 %v2478_v60, 30  ;;  %v364_v15 = vand.u32 2139095040, %v2474_v40  ;;  %v326_v2 = vmul.f32 4e+12, %v2337_v20  ;;  %v223_v5 = vmul.f32 %v2362_v28, %v222_v51 }
 0x129   :  { %1622 = vmatpush.msra.mxu0 %v979_v49  ;;  %1642 = vmatpush.msra.mxu1 %v1603_v10  ;;  %v166_v23 = vmul.f32 %v2332_v61, %v165_v4  ;;  %v278_v43 = vmul.f32 %v2344_v31, %v277_v47  ;;  %v361_v29 = vand.u32 2147483647, %v2474_v40  ;;  %vm280_vm6 = vcmp.eq.f32.partialorder %v2302_v24, inf }
 0x12a   :  { %v617_v7 = vsub.s32 %v613_v45, %v616_v63  ;;  %v365_v38 = vshrl.u32 %v364_v15, 23  ;;  %v331_v17 = vmul.f32 1.442695, %v326_v2  ;;  %v2489_v39 = vmul.f32 0.5, %v223_v5 }
 0x12b   :  { %v167_v20 = vmul.f32 %v166_v23, %v2166_v62  ;;  %v279_v6 = vmul.f32 %v278_v43, %v2302_v24  ;;  %v368_v31 = vand.u32 8388607, %v361_v29  ;;  %vm168_vm7 = vcmp.eq.f32.partialorder %v2166_v62, inf }
 0x12c   :  { %vm618_vm5 = vcmp.lt.s32.totalorder %v617_v7, 0  ;;  %v619_v42 = vsub.s32 0, %v617_v7  ;;  %v1692_v21 = vadd.s32 4294967169, %v365_v38  ;;  %1796 = vpow2.f32 %v331_v17 }
 0x12d   :  { %v225_v55 = vsub.f32 1.5, %v2489_v39  ;;  %v171_v53 = vand.u32 2147483648, %v2166_v62  ;;  %v2500_v48 = vsel %vm168_vm7, %v2166_v62, %v167_v20  ;;  %v283_v58 = vand.u32 2147483648, %v2302_v24 }
 0x12e   :  { %v620_v56 = vsel %vm618_vm5, %v619_v42, %v617_v7  ;;  %v371_v8 = vadd.s32 1, %v1692_v21  ;;  %v281_v34 = vsel %vm280_vm6, %v2302_v24, %v279_v6  ;;  %v609_v25 = vadd.s32 %v2457_v50, %v2460_v13 }
 0x12f   :  { %v621_v1 = vclz %v620_v56  ;;  %v369_v37 = vor.u32 8388608, %v368_v31  ;;  %vm517_vm10 = vcmp.lt.s32.totalorder %v2299_v14, 0  ;;  %vm170_vm11 = vcmp.eq.f32.partialorder %v2166_v62, 0.0 }
 0x130   :  { %vm372_vm8 = vcmp.gt.s32.totalorder %v371_v8, 0  ;;  %vm282_vm12 = vcmp.eq.f32.partialorder %v2302_v24, 0.0  ;;  %vm2525_vm13 = vcmp.le.f32.partialorder %v515_v52, 0.7853982  ;;  %v639_v43 = vsub.s32 4, %v2478_v60 }
 0x131   :  { %v1696_v61 = vadd.s32 4294967294, %v621_v1  ;;  %v373_v30 = vsel %vm372_vm8, %v371_v8, 0  ;;  %vm227_vm6 = vweird.f32 %v2334_v54  ;;  %vm228_vm8 = vweird.f32 %v2362_v28 }
 0x132   :  { %v375_v19 = vand.u32 31, %v373_v30  ;;  %v2506_v41 = vshrl.u32 %v373_v30, 5  ;;  %v2511_v46 = vpop.eup %1796 }
 0x133   :  { %vm1697_vm9 = vcmp.lt.s32.totalorder %v1696_v61, 0 }
 0x134   :  { %v624_v45 = vsel %vm1697_vm9, 0, %v1696_v61  ;;  %v376_v12 = vsub.s32 32, %v375_v19  ;;  %v378_v32 = vshll.u32 %v1857_v0, %v375_v19  ;;  %v381_v51 = vshll.u32 %v1858_v35, %v375_v19 }
 0x135   :  { %v625_v26 = vsub.s32 32, %v624_v45  ;;  %v629_v9 = vsub.s32 4294967266, %v624_v45  ;;  %v626_v33 = vshll.u32 %v617_v7, %v624_v45  ;;  %v384_v50 = vshll.u32 %v1859_v11, %v375_v19 }
 0x136   :  { %v387_v13 = vshll.u32 %v1860_v18, %v375_v19  ;;  %v379_v10 = vshrl.u32 %v1858_v35, %v376_v12  ;;  %v382_v4 = vshrl.u32 %v1859_v11, %v376_v12  ;;  %v385_v47 = vshrl.u32 %v1860_v18, %v376_v12 }
 0x137   :  { %v627_v27 = vshrl.u32 %v609_v25, %v625_v26  ;;  %v630_v49 = vadd.s32 127, %v629_v9  ;;  %v390_v63 = vshll.u32 %v1861_v22, %v375_v19  ;;  %v388_v5 = vshrl.u32 %v1861_v22, %v376_v12 }
 0x138   :  { %v391_v7 = vshrl.u32 %v2671_v16, %v376_v12  ;;  %v2529_v11 = vor.u32 %v379_v10, %v378_v32  ;;  %v2531_v18 = vor.u32 %v382_v4, %v381_v51  ;;  %v386_v38 = vor.u32 %v385_v47, %v384_v50 }
 0x139   :  { %v628_v15 = vor.u32 %v627_v27, %v626_v33  ;;  %v631_v2 = vshll.u32 %v630_v49, 23  ;;  %v389_v42 = vor.u32 %v388_v5, %v387_v13  ;;  %vm393_vm14 = vcmp.lt.s32.totalorder %v2506_v41, 1 }
 0x13a   :  { %v392_v17 = vor.u32 %v391_v7, %v390_v63  ;;  %vm396_vm15 = vcmp.lt.s32.totalorder %v2506_v41, 4  ;;  %v2536_v22 = vshll.u32 %v369_v37, 8  ;;  %vm395_vm0 = vcmp.lt.s32.totalorder %v2506_v41, 3 }
 0x13b   :  { %v632_v23 = vor.u32 4788187, %v631_v2  ;;  %v635_v21 = vcvt.s32.f32 %v628_v15  ;;  %v401_v16 = vsel %vm393_vm14, %v2529_v11, %v2531_v18  ;;  %v402_v56 = vsel %vm396_vm15, %v389_v42, 920167782 }
 0x13c   :  { %vm394_vm1 = vcmp.lt.s32.totalorder %v2506_v41, 2  ;;  %v403_v20 = vsel %vm395_vm0, %v386_v38, %v402_v56  ;;  %v405_v1 = vsel %vm393_vm14, %v2531_v18, %v386_v38  ;;  %v406_v8 = vsel %vm396_vm15, %v392_v17, 1326507024 }
 0x13d   :  { %v633_v52 = vand.u32 2147483647, %v632_v23  ;;  %v640_v61 = vsel %vm517_vm10, %v639_v43, %v2478_v60  ;;  %v404_v31 = vsel %vm394_vm1, %v401_v16, %v403_v20  ;;  %v407_v30 = vsel %vm395_vm0, %v389_v42, %v406_v8 }
 0x13e   :  { %v408_v25 = vsel %vm394_vm1, %v405_v1, %v407_v30  ;;  %v410_v45 = vand.u32 65535, %v2536_v22  ;;  %v434_v19 = vand.u32 65535, %v404_v31  ;;  %v435_v26 = vshrl.u32 %v404_v31, 16 }
 0x13f   :  { %v636_v6 = vmul.f32 %v635_v21, %v633_v52  ;;  %v411_v37 = vshrl.u32 %v2536_v22, 16  ;;  %v412_v33 = vand.u32 65535, %v408_v25  ;;  %v413_v32 = vshrl.u32 %v408_v25, 16 }
 0x140   :  { %v172_v60 = vsel %vm170_vm11, %v171_v53, %v2500_v48  ;;  %v284_v51 = vsel %vm282_vm12, %v283_v58, %v281_v34  ;;  %v642_v27 = vsel %vm2525_vm13, 0, %v640_v61  ;;  %v437_v49 = vmul.u32 %v435_v26, %v410_v45 }
 0x141   :  { %v637_v9 = vxor.u32 2147483648, %v636_v6  ;;  %v377_v13 = vshrl.u32 %v1857_v0, %v376_v12  ;;  %v415_v10 = vmul.u32 %v413_v32, %v410_v45  ;;  %v416_v4 = vmul.u32 %v412_v33, %v411_v37 }
 0x142   :  { %v436_v48 = vmul.u32 %v434_v19, %v410_v45  ;;  %v438_v47 = vmul.u32 %v434_v19, %v411_v37  ;;  %v440_v63 = vshll.u32 %v437_v49, 16  ;;  %v398_v58 = vsel %vm396_vm15, %v386_v38, 2102212464  ;;  %vm229_vm15 = vmor %vm227_vm6, %vm228_vm8 }
 0x143   :  { %v638_v50 = vsel %vm517_vm10, %v637_v9, %v636_v6  ;;  %v414_v34 = vmul.u32 %v412_v33, %v410_v45  ;;  %v418_v15 = vshll.u32 %v415_v10, 16  ;;  %v417_v2 = vmul.u32 %v413_v32, %v411_v37 }
 0x144   :  { %v641_v53 = vsel %vm2525_vm13, %v2299_v14, %v638_v50  ;;  %v420_v5 = vshll.u32 %v416_v4, 16  ;;  %v439_v7 = vmul.u32 %v435_v26, %v411_v37  ;;  %vm444_vm2 = vc.u32 %v436_v48, %v440_v63 }
 0x145   :  { %v643_v24 = vmul.f32 %v641_v53, %v641_v53  ;;  %vm422_vm3 = vc.u32 %v414_v34, %v418_v15  ;;  %v424_v23 = vadd.s32 %v418_v15, %v414_v34  ;;  %v442_v43 = vshll.u32 %v438_v47, 16 }
 0x146   :  { %v423_v35 = vsel %vm422_vm3, 1, %v1856_v3  ;;  %v445_v42 = vsel %vm444_vm2, 1, %v1856_v3  ;;  %v446_v17 = vadd.s32 %v440_v63, %v436_v48  ;;  %v419_v38 = vshrl.u32 %v415_v10, 16 }
 0x147   :  { %v644_v0 = vmul.f32 -0.001358992, %v643_v24  ;;  %v651_v12 = vmul.f32 -0.00019511016, %v643_v24  ;;  %v425_v16 = vadd.s32 %v423_v35, %v417_v2  ;;  %vm426_vm4 = vc.u32 %v424_v23, %v420_v5 }
 0x148   :  { %v427_v56 = vsel %vm426_vm4, 1, %v1856_v3  ;;  %v447_v20 = vadd.s32 %v445_v42, %v439_v7  ;;  %vm448_vm5 = vc.u32 %v446_v17, %v442_v43  ;;  %v397_v31 = vsel %vm393_vm14, %v377_v13, %v2529_v11 }
 0x149   :  { %v645_v21 = vadd.f32 0.041655596, %v644_v0  ;;  %v652_v52 = vadd.f32 0.008332121, %v651_v12  ;;  %v429_v6 = vadd.s32 %v427_v56, %v425_v16  ;;  %v449_v61 = vsel %vm448_vm5, 1, %v1856_v3 }
 0x14a   :  { %v399_v30 = vsel %vm395_vm0, %v2531_v18, %v398_v58  ;;  %v441_v25 = vshrl.u32 %v437_v49, 16  ;;  %v451_v45 = vadd.s32 %v449_v61, %v447_v20  ;;  %v421_v9 = vshrl.u32 %v416_v4, 16 }
 0x14b   :  { %v646_v1 = vmul.f32 %v645_v21, %v643_v24  ;;  %v653_v8 = vmul.f32 %v652_v52, %v643_v24  ;;  %v430_v37 = vadd.s32 %v429_v6, %v419_v38  ;;  %v198_v33 = vmul.f32 0.00045067532, %v172_v60 }
 0x14c   :  { %v1280_v32 = vadd.s32 3, %v642_v27  ;;  %v443_v50 = vshrl.u32 %v438_v47, 16  ;;  %v452_v10 = vadd.s32 %v451_v45, %v441_v25  ;;  %v450_v34 = vadd.s32 %v446_v17, %v442_v43 }
 0x14d   :  { %v647_v19 = vadd.f32 -0.4999988, %v646_v1  ;;  %v654_v26 = vadd.f32 -0.16666654, %v653_v8  ;;  %v431_v63 = vadd.s32 %v430_v37, %v421_v9  ;;  %v310_v15 = vmul.f32 0.4, %v284_v51 }
 0x14e   :  { %v659_v11 = vand.u32 3, %v642_v27  ;;  %v400_v13 = vsel %vm394_vm1, %v397_v31, %v399_v30  ;;  %v453_v18 = vadd.s32 %v452_v10, %v443_v50  ;;  %v202_v60 = vmul.f32 %v2166_v62, %v1955_v36 }
 0x14f   :  { %v648_v48 = vmul.f32 %v647_v19, %v643_v24  ;;  %v655_v3 = vmul.f32 %v654_v26, %v643_v24  ;;  %vm456_vm7 = vc.u32 %v431_v63, %v450_v34  ;;  %v1281_v4 = vand.u32 3, %v1280_v32 }
 0x150   :  { %v457_v47 = vadd.s32 1, %v453_v18  ;;  %v226_v51 = vmul.f32 %v2362_v28, %v225_v55  ;;  %v454_v24 = vmul.u32 %v2536_v22, %v400_v13  ;;  %v206_v2 = vmul.f32 %v202_v60, %v198_v33 }
 0x151   :  { %v649_v49 = vadd.f32 1.0, %v648_v48  ;;  %v656_v58 = vadd.f32 1.0, %v655_v3  ;;  %v338_v5 = vmul.f32 %v2511_v46, %v310_v15  ;;  %vm660_vm9 = vcmp.lt.s32.totalorder %v659_v11, 2 }
 0x152   :  { %v458_v7 = vsel %vm456_vm7, %v457_v47, %v453_v18  ;;  %vm661_vm10 = vcmp.eq.s32.totalorder %v659_v11, 0  ;;  %vm664_vm11 = vcmp.eq.s32.totalorder %v659_v11, 2  ;;  %vm1282_vm12 = vcmp.lt.s32.totalorder %v1281_v4, 2 }
 0x153   :  { %v657_v27 = vmul.f32 %v656_v58, %v641_v53  ;;  %v665_v41 = vxor.u32 2147483648, %v649_v49  ;;  %v459_v12 = vadd.s32 %v458_v7, %v454_v24  ;;  %vm1283_vm13 = vcmp.eq.s32.totalorder %v1281_v4, 0 }
 0x154   :  { %vm1286_vm14 = vcmp.eq.s32.totalorder %v1281_v4, 2  ;;  %v342_v46 = vadd.f32 %v338_v5, %v206_v2  ;;  %vm658_vm0 = vweird.f32 %v2299_v14  ;;  %v2611_v35 = vsel %vm229_vm15, %v2362_v28, %v226_v51 }
 0x155   :  { %v662_v0 = vxor.u32 2147483648, %v657_v27  ;;  %v666_v36 = vsel %vm664_vm11, %v665_v41, %v657_v27  ;;  %v1288_v55 = vsel %vm1286_vm14, %v665_v41, %v657_v27  ;;  %v460_v53 = vadd.s32 536870912, %v459_v12 }
 0x156   :  { %1798 = vrsqrt.f32 %v2611_v35  ;;  %v455_v31 = vadd.s32 %v450_v34, %v431_v63  ;;  %v317_v3 = vmul.f32 %v2611_v35, %v2611_v35  ;;  %v313_v13 = vsub.f32 0.0, %v2047_v44 }
 0x157   :  { %v663_v62 = vsel %vm661_vm10, %v649_v49, %v662_v0  ;;  %v1285_v39 = vsel %vm1283_vm13, %v649_v49, %v662_v0  ;;  %v461_v17 = vshrl.u32 %v460_v53, 30  ;;  %1800 = vrsqrt.f32 %v2314_v59 }
 0x158   :  { %v667_v22 = vsel %vm660_vm9, %v663_v62, %v666_v36  ;;  %v1289_v23 = vsel %vm1282_vm12, %v1285_v39, %v1288_v55  ;;  %v321_v49 = vmul.f32 %v317_v3, %v313_v13  ;;  %vm363_vm3 = vcmp.lt.s32.totalorder %v2474_v40, 0  ;;  %v34_v3 = vld [vmem:[%s2658_s4] sm:$0xf]  ;;  %s1667_s4 = sshll.u32 %s2659_s5, 4  ;;  %s1668_s4 = int_to_ptr.hbm [resolvable:$true] %s1667_s4 }
 0x159   :  { %v668_v43 = vsel %vm658_vm0, nan, %v667_v22  ;;  %v1290_v42 = vsel %vm658_vm0, nan, %v1289_v23  ;;  %v462_v16 = vshll.u32 %v461_v17, 30  ;;  %vm2623_vm4 = vcmp.le.f32.partialorder %v361_v29, 0.7853982 }
 0x15a   :  { %v978_v21 = vmul.f32 %v668_v43, %v342_v46  ;;  %v1602_v52 = vmul.f32 %v1290_v42, %v342_v46  ;;  %v325_v27 = vmul.f32 4e+12, %v321_v49  ;;  %v485_v41 = vsub.s32 4, %v461_v17 }
 0x15b   :  { %v463_v54 = vsub.s32 %v459_v12, %v462_v16  ;;  %vm268_vm5 = vcmp.eq.f32.partialorder %v2611_v35, inf  ;;  %vm156_vm6 = vcmp.eq.f32.partialorder %v2314_v59, inf  ;;  %v271_v55 = vand.u32 2147483648, %v2611_v35 }
 0x15c   :  { %1623 = vmatpush.msra.mxu0 %v978_v21  ;;  %1643 = vmatpush.msra.mxu1 %v1602_v52  ;;  %v1799_v56 = vpop.eup %1798  ;;  %v329_v12 = vmul.f32 1.442695, %v325_v27  ;;  %v486_v36 = vsel %vm363_vm3, %v485_v41, %v461_v17  ;;  %v159_v43 = vand.u32 2147483648, %v2314_v59  ;;  %vm270_vm7 = vcmp.eq.f32.partialorder %v2611_v35, 0.0 }
 0x15d   :  { %vm464_vm1 = vcmp.lt.s32.totalorder %v463_v54, 0  ;;  %v465_v14 = vsub.s32 0, %v463_v54  ;;  %v1801_v28 = vpop.eup %1800  ;;  %v262_v8 = vmul.f32 %v1799_v56, %v2611_v35  ;;  %v488_v46 = vsel %vm2623_vm4, 0, %v486_v36 }
 0x15e   :  { %v150_v6 = vmul.f32 %v1801_v28, %v2314_v59  ;;  %1802 = vpow2.f32 %v329_v12  ;;  %vm158_vm8 = vcmp.eq.f32.partialorder %v2314_v59, 0.0  ;;  %v1125_v16 = vadd.s32 3, %v488_v46 }
 0x15f   :  { %v466_v38 = vsel %vm464_vm1, %v465_v14, %v463_v54  ;;  %v263_v45 = vmul.f32 %v1799_v56, %v262_v8  ;;  %vm504_vm15 = vweird.f32 %v2474_v40  ;;  %vm1605_vm0 = vcmask 261120  }
 0x160   :  { %v467_v20 = vclz %v466_v38  ;;  %v151_v19 = vmul.f32 %v1801_v28, %v150_v6  ;;  %v1126_v6 = vand.u32 3, %v1125_v16  ;;  %vm1657_vm1 = vcmask 517120  }
 0x161   :  { %v264_v50 = vmul.f32 0.5, %v263_v45 }
 0x162   :  { %v1693_v1 = vadd.s32 4294967294, %v467_v20  ;;  %v152_v10 = vmul.f32 0.5, %v151_v19  ;;  %vm1127_vm12 = vcmp.lt.s32.totalorder %v1126_v6, 2  ;;  %vm1128_vm13 = vcmp.eq.s32.totalorder %v1126_v6, 0 }
 0x163   :  { %v265_v63 = vsub.f32 1.5, %v264_v50  ;;  %vm1131_vm14 = vcmp.eq.s32.totalorder %v1126_v6, 2 }
 0x164   :  { %vm1694_vm2 = vcmp.lt.s32.totalorder %v1693_v1, 0  ;;  %v153_v34 = vsub.f32 1.5, %v152_v10  ;;  %v1803_v8 = vpop.eup %1802 }
 0x165   :  { %v470_v61 = vsel %vm1694_vm2, 0, %v1693_v1  ;;  %v266_v60 = vmul.f32 %v1799_v56, %v265_v63  ;;  %v505_v1 = vand.u32 3, %v488_v46 }
 0x166   :  { %v471_v30 = vsub.s32 32, %v470_v61  ;;  %v475_v25 = vsub.s32 4294967266, %v470_v61  ;;  %v472_v26 = vshll.u32 %v463_v54, %v470_v61  ;;  %v154_v4 = vmul.f32 %v1801_v28, %v153_v34 }
 0x167   :  { %v267_v2 = vmul.f32 %v266_v60, %v2611_v35  ;;  %v201_v61 = vmul.f32 %v2314_v59, %v2016_v57  ;;  %vm506_vm9 = vcmp.lt.s32.totalorder %v505_v1, 2  ;;  %vm507_vm10 = vcmp.eq.s32.totalorder %v505_v1, 0 }
 0x168   :  { %v473_v9 = vshrl.u32 %v455_v31, %v471_v30  ;;  %v476_v37 = vadd.s32 127, %v475_v25  ;;  %v155_v5 = vmul.f32 %v154_v4, %v2314_v59  ;;  %vm510_vm11 = vcmp.eq.s32.totalorder %v505_v1, 2 }
 0x169   :  { %v269_v39 = vsel %vm268_vm5, %v2611_v35, %v267_v2 }
 0x16a   :  { %v474_v33 = vor.u32 %v473_v9, %v472_v26  ;;  %v477_v32 = vshll.u32 %v476_v37, 23  ;;  %v157_v53 = vsel %vm156_vm6, %v2314_v59, %v155_v5  ;;  %v272_v42 = vsel %vm270_vm7, %v271_v55, %v269_v39 }
 0x16b   :  { %v160_v52 = vsel %vm158_vm8, %v159_v43, %v157_v53  ;;  %v309_v38 = vmul.f32 0.4, %v272_v42 }
 0x16c   :  { %v478_v48 = vor.u32 4788187, %v477_v32  ;;  %v481_v11 = vcvt.s32.f32 %v474_v33  ;;  %v197_v56 = vmul.f32 0.00045067532, %v160_v52 }
 0x16d   :  { %v337_v30 = vmul.f32 %v1803_v8, %v309_v38 }
 0x16e   :  { %v479_v15 = vand.u32 2147483647, %v478_v48  ;;  %v205_v25 = vmul.f32 %v201_v61, %v197_v56 }
 0x170   :  { %v482_v18 = vmul.f32 %v481_v11, %v479_v15  ;;  %v341_v33 = vadd.f32 %v337_v30, %v205_v25 }
 0x172   :  { %v483_v58 = vxor.u32 2147483648, %v482_v18 }
 0x174   :  { %v484_v51 = vsel %vm363_vm3, %v483_v58, %v482_v18 }
 0x175   :  { %v487_v44 = vsel %vm2623_vm4, %v2474_v40, %v484_v51 }
 0x176   :  { %v489_v24 = vmul.f32 %v487_v44, %v487_v44 }
 0x178   :  { %v490_v7 = vmul.f32 -0.001358992, %v489_v24  ;;  %v497_v0 = vmul.f32 -0.00019511016, %v489_v24 }
 0x17a   :  { %v491_v29 = vadd.f32 0.041655596, %v490_v7  ;;  %v498_v62 = vadd.f32 0.008332121, %v497_v0 }
 0x17c   :  { %v492_v22 = vmul.f32 %v491_v29, %v489_v24  ;;  %v499_v23 = vmul.f32 %v498_v62, %v489_v24 }
 0x17e   :  { %v493_v17 = vadd.f32 -0.4999988, %v492_v22  ;;  %v500_v21 = vadd.f32 -0.16666654, %v499_v23 }
 0x180   :  { %v494_v54 = vmul.f32 %v493_v17, %v489_v24  ;;  %v501_v14 = vmul.f32 %v500_v21, %v489_v24 }
 0x182   :  { %v495_v20 = vadd.f32 1.0, %v494_v54  ;;  %v502_v28 = vadd.f32 1.0, %v501_v14 }
 0x184   :  { %v503_v35 = vmul.f32 %v502_v28, %v487_v44  ;;  %v511_v31 = vxor.u32 2147483648, %v495_v20 }
 0x186   :  { %v508_v45 = vxor.u32 2147483648, %v503_v35  ;;  %v512_v26 = vsel %vm510_vm11, %v511_v31, %v503_v35  ;;  %v1133_v37 = vsel %vm1131_vm14, %v511_v31, %v503_v35 }
 0x188   :  { %v509_v19 = vsel %vm507_vm10, %v495_v20, %v508_v45  ;;  %v1130_v9 = vsel %vm1128_vm13, %v495_v20, %v508_v45 }
 0x189   :  { %v513_v32 = vsel %vm506_vm9, %v509_v19, %v512_v26  ;;  %v1134_v57 = vsel %vm1127_vm12, %v1130_v9, %v1133_v37 }
 0x18a   :  { %v514_v59 = vsel %vm504_vm15, nan, %v513_v32  ;;  %v1135_v50 = vsel %vm504_vm15, nan, %v1134_v57 }
 0x18b   :  { %v977_v10 = vmul.f32 %v514_v59, %v341_v33  ;;  %v1601_v48 = vmul.f32 %v1135_v50, %v341_v33 }
 0x18d   :  { %1624 = vmatpush.msra.mxu0 %v977_v10  ;;  %1644 = vmatpush.msra.mxu1 %v1601_v48 }
 0x18e   :  { %1716 = vmatmul.msk.f32.vlgmr.msra.gmra.mxu0 %vm1605_vm0, %v34_v3  ;;  %1717 = vmatmul.msk.f32.vlgmr.msra.gmra.mxu1 %vm1605_vm0, %v34_v3 }
 0x20b   :  { %v1626_v15 = vpop.f32.mrf.mxu0  ;;  %v1646_v11 = vpop.f32.mrf.mxu1 }
 0x20c   :  { %v1654_v40 = vrot.slane %v1626_v15, 2  ;;  %v1650_v13 = vrot.slane %v1646_v11, 2 }
 0x20e   :  { %v1652_v63 = vsub.f32 %v1626_v15, %v1650_v13  ;;  %v1656_v34 = vadd.f32 %v1654_v40, %v1646_v11 }
 0x210   :  { %1659 = vst.msk [vmem:[#allocation4] sm:$0x3] %vm1657_vm1, %v1656_v34 }
 0x211   :  { %1658 = vst.msk [vmem:[#allocation2] sm:$0x3] %vm1657_vm1, %v1652_v63  ;;  %1681 = dma.vmem_to_hbm [thread:$0]  %s1677_s16, 32, %s1679_s19, [#allocation5]  }
 0x212   :  { %1670 = dma.vmem_to_hbm [thread:$0]  %s1666_s21, 32, %s1668_s4, [#allocation3]  }
 0x213   :  { %1852 = dma.done.wait [#allocation3], 32  }
 0x214   :  { %1853 = vsyncadd [#allocation3], 4294967264 }
 0x215   :  { %1854 = dma.done.wait [#allocation5], 32  }
 0x216   :  { %1855 = vsyncadd [#allocation5], 4294967264 }
 0x217   :  { %1690 = vsyncpa [#allocation3], 1 }
 0x218   :  { %1691 = vsyncpa [#allocation5], 1 }

</bundles_post_ra>
